<compile_context>
chip_gen: v6e
topology: v6e:2x2x1
jax: 0.10.0
libtpu: 0.0.40
codegen_flags: <defaults>
</compile_context>

<pallas_src>
import functools

import jax
import jax.numpy as jnp
from jax import lax
from jax.experimental import pallas as pl
from jax.experimental.pallas import tpu as pltpu


# ------------------------------- Pallas kernel ------------------------------

def br_fused_kernel(x_ref, w1_ref, b1_ref, g_ref, be_ref, gsel_ref, esel_ref,
                    wt_ref, bt_ref, w2_ref, b2_ref, w3_ref, b3_ref, o_ref,
                    *, d_dim, eps):
    nd = x_ref.shape[0]
    # Rows are (n, d) planes; dpos = depth position of a row within its sample.
    dpos = lax.broadcasted_iota(jnp.int32, (nd, 1), 0) % d_dim
    has_prev = dpos > 0            # plane d-1 exists within the same sample
    has_next = dpos < d_dim - 1    # plane d+1 exists within the same sample

    def conv3x3x3(a, w_ref, b_ref):
        """3x3x3 'same' conv as ONE bf16 GEMM.

        a     : (N*D, HW*Cin)  f32 activation planes, channel fastest in lanes
        w_ref : (3*HW*Cin, HW*Cout) bf16 banded weights (kd-major; H/W padding
                and the 3x3 in-plane stencil folded in host-side)
        b_ref : (1, HW*Cout)   f32 bias row
        """
        # pltpu.roll == jnp.roll semantics; +1 brings plane d-1 to row d,
        # nd-1 (== -1) brings plane d+1.  The masks zero rows whose neighbour
        # would wrap around or cross a sample boundary (D zero padding).
        up = jnp.where(has_prev, pltpu.roll(a, 1, axis=0), 0.0)
        dn = jnp.where(has_next, pltpu.roll(a, nd - 1, axis=0), 0.0)
        a_cat = jnp.concatenate([up, a, dn], axis=1).astype(jnp.bfloat16)
        return jnp.dot(a_cat, w_ref[...],
                       preferred_element_type=jnp.float32) + b_ref[...]

    x = x_ref[...]                                            # (N*D, HW*C0) f32

    # ---- conv1 -> BatchNorm3d (training-mode batch stats, biased var) -> ReLU
    y = conv3x3x3(x, w1_ref, b1_ref)                          # (N*D, HW*C1) f32
    # One-pass stats: gsel has 1/(N*D*H*W) folded in, so these are E[y], E[y^2].
    mean = jnp.dot(jnp.sum(y, axis=0, keepdims=True), gsel_ref[...],
                   preferred_element_type=jnp.float32)        # (1, C1)
    ex2 = jnp.dot(jnp.sum(y * y, axis=0, keepdims=True), gsel_ref[...],
                  preferred_element_type=jnp.float32)         # (1, C1)
    var = ex2 - mean * mean
    scale = g_ref[...] * lax.rsqrt(var + eps)                 # (1, C1)
    shift = be_ref[...] - scale * mean                        # (1, C1)
    coef_s = jnp.dot(scale, esel_ref[...], preferred_element_type=jnp.float32)
    coef_b = jnp.dot(shift, esel_ref[...], preferred_element_type=jnp.float32)
    y = jnp.maximum(y * coef_s + coef_b, 0.0)                 # single pass

    # ---- transposeconv1 (stride=1, pad=1 == same conv with flipped kernel) --
    x_left = conv3x3x3(y, wt_ref, bt_ref)                     # (N*D, HW*CC)

    # ---- conv2 -> ReLU ----
    x_right = jnp.maximum(conv3x3x3(x_left, w2_ref, b2_ref), 0.0)

    # ---- conv3 + residual add (x_left never leaves VMEM) ----
    o_ref[...] = x_left + conv3x3x3(x_right, w3_ref, b3_ref)  # lane-dense store


# ------------------------------- JAX wrapper --------------------------------

def br_forward(x_ncdhw, kp):
    N, C0, D, H, W = x_ncdhw.shape
    hw = H * W
    n_class = kp['w3'].shape[-1] // hw
    nd = N * D
    # NCDHW -> (N*D, H*W*C0) lane-dense planes (single XLA transpose+reshape).
    x2 = jnp.transpose(x_ncdhw, (0, 2, 3, 4, 1)).reshape(nd, hw * C0)

    mat_flops = 2 * nd * sum(int(kp[k].shape[0]) * int(kp[k].shape[1])
                             for k in ('w1', 'wt', 'w2', 'w3'))
    bytes_acc = (int(x2.size) * 4 + nd * hw * n_class * 4
                 + sum(int(v.size) * int(v.dtype.itemsize) for v in kp.values()))
    cost = pl.CostEstimate(flops=mat_flops,
                           transcendentals=int(kp['gamma'].size),
                           bytes_accessed=bytes_acc)

    out2d = pl.pallas_call(
        functools.partial(br_fused_kernel, d_dim=D, eps=1e-5),
        out_shape=jax.ShapeDtypeStruct((nd, hw * n_class), jnp.float32),
        in_specs=[pl.BlockSpec(memory_space=pltpu.MemorySpace.VMEM)] * 13,
        out_specs=pl.BlockSpec(memory_space=pltpu.MemorySpace.VMEM),
        compiler_params=pltpu.CompilerParams(vmem_limit_bytes=32 * 1024 * 1024),
        cost_estimate=cost,
    )(x2, kp['w1'], kp['b1'], kp['gamma'], kp['beta'], kp['gsel'], kp['esel'],
      kp['wt'], kp['bt'], kp['w2'], kp['b2'], kp['w3'], kp['b3'])
    return jnp.transpose(out2d.reshape(N, D, H, W, n_class), (0, 4, 1, 2, 3))


# --------------------- host-side (one-time) weight packing ------------------

def _shift_mat(L, k):
    # M[a_in, b_out] = 1 iff a_in == b_out + k - 1  (zero padding implicit)
    idx = jnp.arange(L)
    return (idx[:, None] == idx[None, :] + (k - 1)).astype(jnp.float32)


def _plane_weights(w_dhwio, H, W):
    # (3,3,3,Cin,Cout) -> (3, H*W*Cin, H*W*Cout) banded matrices folding the
    # 3x3 in-plane stencil and the H/W zero padding.
    S = jnp.stack([_shift_mat(H, k) for k in range(3)], 0)    # (3, Hin, Hout)
    T = jnp.stack([_shift_mat(W, k) for k in range(3)], 0)    # (3, Win, Wout)
    Wp = jnp.einsum('khp,lwq,dklio->dhwipqo', S, T, w_dhwio)
    Cin, Cout = w_dhwio.shape[3], w_dhwio.shape[4]
    return Wp.reshape(3, H * W * Cin, H * W * Cout)


def _pack_w(w_dhwio, H, W):
    # Stack the 3 depth taps along K (rows) and cast to bf16 for the MXU.
    wp = _plane_weights(w_dhwio, H, W)
    return wp.reshape(3 * wp.shape[1], wp.shape[2]).astype(jnp.bfloat16)


def _tile_bias(b, hw):
    return jnp.tile(b, hw).reshape(1, hw * b.shape[0])


def _selectors(hw, C):
    # gsel: (hw*C, C) column->channel gather; esel = gsel.T channel->column expand
    cols = jnp.arange(hw * C) % C
    gsel = (cols[:, None] == jnp.arange(C)[None, :]).astype(jnp.float32)
    return gsel, gsel.T


def _w_conv(w_oidhw):
    # torch Conv3d weight (Cout, Cin, kd, kh, kw) -> (kd, kh, kw, Cin, Cout)
    return jnp.transpose(w_oidhw, (2, 3, 4, 1, 0))


def _w_convT(w_iodhw):
    # torch ConvTranspose3d weight (Cin, Cout, kd, kh, kw); stride=1/pad=1 is a
    # same-padding conv with spatially flipped kernel & swapped channel axes.
    return jnp.transpose(w_iodhw[:, :, ::-1, ::-1, ::-1], (2, 3, 4, 0, 1))


def init_raw_params(key, out_c, n_class):
    ks = jax.random.split(key, 10)
    s = 0.1
    return {
        'w1': jax.random.normal(ks[0], (out_c, out_c, 3, 3, 3), jnp.float32) * s,
        'b1': jax.random.normal(ks[1], (out_c,), jnp.float32) * s,
        'gamma': 1.0 + 0.1 * jax.random.normal(ks[2], (out_c,), jnp.float32),
        'beta': 0.1 * jax.random.normal(ks[3], (out_c,), jnp.float32),
        'wt': jax.random.normal(ks[4], (out_c, n_class, 3, 3, 3), jnp.float32) * s,
        'bt': jax.random.normal(ks[5], (n_class,), jnp.float32) * s,
        'w2': jax.random.normal(ks[6], (n_class, n_class, 3, 3, 3), jnp.float32) * s,
        'b2': jax.random.normal(ks[7], (n_class,), jnp.float32) * s,
        'w3': jax.random.normal(ks[8], (n_class, n_class, 3, 3, 3), jnp.float32) * s,
        'b3': jax.random.normal(ks[9], (n_class,), jnp.float32) * s,
    }


def prepare_params(raw, N, D, H, W):
    hw = H * W
    out_c = raw['w1'].shape[0]
    cnt = float(N * D * hw)
    gsel, esel = _selectors(hw, out_c)
    return {
        'w1': _pack_w(_w_conv(raw['w1']), H, W),
        'b1': _tile_bias(raw['b1'], hw),
        'gamma': raw['gamma'].reshape(1, -1),
        'beta': raw['beta'].reshape(1, -1),
        'gsel': gsel / cnt,          # gather + BN mean divisor folded together
        'esel': esel,
        'wt': _pack_w(_w_convT(raw['wt']), H, W),
        'bt': _tile_bias(raw['bt'], hw),
        'w2': _pack_w(_w_conv(raw['w2']), H, W),
        'b2': _tile_bias(raw['b2'], hw),
        'w3': _pack_w(_w_conv(raw['w3']), H, W),
        'b3': _tile_bias(raw['b3'], hw),
    }


# --------------------------- pure-JAX reference -----------------------------

def _conv3d_ref(x, w_dhwio, b):
    y = lax.conv_general_dilated(x, w_dhwio, (1, 1, 1), ((1, 1),) * 3,
                                 dimension_numbers=('NDHWC', 'DHWIO', 'NDHWC'))
    return y + b.reshape(1, 1, 1, 1, -1)


def br_forward_ref(x_ncdhw, raw, eps=1e-5):
    x = jnp.transpose(x_ncdhw, (0, 2, 3, 4, 1))
    y = _conv3d_ref(x, _w_conv(raw['w1']), raw['b1'])
    mean = jnp.mean(y, axis=(0, 1, 2, 3), keepdims=True)
    var = jnp.mean(jnp.square(y - mean), axis=(0, 1, 2, 3), keepdims=True)
    y = jnp.maximum((y - mean) * lax.rsqrt(var + eps)
                    * raw['gamma'].reshape(1, 1, 1, 1, -1)
                    + raw['beta'].reshape(1, 1, 1, 1, -1), 0.0)
    x_left = _conv3d_ref(y, _w_convT(raw['wt']), raw['bt'])
    x_right = jnp.maximum(_conv3d_ref(x_left, _w_conv(raw['w2']), raw['b2']), 0.0)
    x_right = _conv3d_ref(x_right, _w_conv(raw['w3']), raw['b3'])
    return jnp.transpose(x_left + x_right, (0, 4, 1, 2, 3))


# ----------------------------------- main ------------------------------------

if __name__ == "__main__":
    out_c, n_class = 4, 2
    N, D, H, W = 2, 8, 8, 8

    key = jax.random.PRNGKey(0)
    k_x, k_p = jax.random.split(key)
    x = jax.random.normal(k_x, (N, out_c, D, H, W), jnp.float32)  # NCDHW like torch
    raw = init_raw_params(k_p, out_c, n_class)
    kp = prepare_params(raw, N, D, H, W)

    out = jax.block_until_ready(jax.jit(br_forward)(x, kp))
    ref = jax.block_until_ready(br_forward_ref(x, raw))

    assert out.shape == (N, n_class, D, H, W)
    max_err = float(jnp.max(jnp.abs(out - ref)))
    # bf16 MXU operands (perf-review item 1) vs. f32 reference -> relaxed
    # tolerance; ~2^-9 relative per operand across 4 conv stages.
    if max_err > 5e-2 or not bool(jnp.all(jnp.isfinite(out))):
        raise AssertionError(f"mismatch vs reference, max_err={max_err}")

    print("KERNEL_OK")
</pallas_src>

<mosaic_0001>
module attributes {stable_mosaic.version = 11 : i64} {
  func.func @br_fused_kernel(%arg0: memref<16x256xf32, #tpu.memory_space<vmem>>, %arg1: memref<768x256xbf16, #tpu.memory_space<vmem>>, %arg2: memref<1x256xf32, #tpu.memory_space<vmem>>, %arg3: memref<1x4xf32, #tpu.memory_space<vmem>>, %arg4: memref<1x4xf32, #tpu.memory_space<vmem>>, %arg5: memref<256x4xf32, #tpu.memory_space<vmem>>, %arg6: memref<4x256xf32, #tpu.memory_space<vmem>>, %arg7: memref<768x128xbf16, #tpu.memory_space<vmem>>, %arg8: memref<1x128xf32, #tpu.memory_space<vmem>>, %arg9: memref<384x128xbf16, #tpu.memory_space<vmem>>, %arg10: memref<1x128xf32, #tpu.memory_space<vmem>>, %arg11: memref<384x128xbf16, #tpu.memory_space<vmem>>, %arg12: memref<1x128xf32, #tpu.memory_space<vmem>>, %arg13: memref<16x128xf32, #tpu.memory_space<vmem>>) attributes {dimension_semantics = [], scalar_prefetch = 0 : i64, scratch_operands = 0 : i64, tpu.core_type = #tpu.core_type<tc>} {
    %0 = tpu.iota {dimensions = array<i32: 0>} : vector<16x1xi32>
    %c8_i32 = arith.constant 8 : i32
    %c0_i32 = arith.constant 0 : i32
    %1 = arith.cmpi eq, %c8_i32, %c0_i32 : i32
    %c1_i32 = arith.constant 1 : i32
    %2 = arith.select %1, %c1_i32, %c8_i32 : i32
    %3 = vector.broadcast %2 : i32 to vector<16x1xi32>
    %4 = arith.remsi %0, %3 : vector<16x1xi32>
    %c0_i32_0 = arith.constant 0 : i32
    %5 = vector.broadcast %c0_i32_0 : i32 to vector<16x1xi32>
    %6 = arith.cmpi ne, %4, %5 : vector<16x1xi32>
    %c0_i32_1 = arith.constant 0 : i32
    %7 = vector.broadcast %c0_i32_1 : i32 to vector<16x1xi32>
    %8 = arith.cmpi slt, %4, %7 : vector<16x1xi32>
    %c0_i32_2 = arith.constant 0 : i32
    %9 = arith.cmpi slt, %2, %c0_i32_2 : i32
    %10 = vector.broadcast %9 : i1 to vector<16x1xi1>
    %11 = vector.broadcast %10 : vector<16x1xi1> to vector<16x1xi1>
    %12 = arith.xori %8, %11 : vector<16x1xi1>
    %13 = arith.andi %12, %6 : vector<16x1xi1>
    %14 = vector.broadcast %2 : i32 to vector<16x1xi32>
    %15 = arith.addi %4, %14 : vector<16x1xi32>
    %16 = arith.select %13, %15, %4 : vector<16x1xi1>, vector<16x1xi32>
    %c0_i32_3 = arith.constant 0 : i32
    %17 = vector.broadcast %c0_i32_3 : i32 to vector<16x1xi32>
    %18 = arith.cmpi sgt, %16, %17 : vector<16x1xi32>
    %c7_i32 = arith.constant 7 : i32
    %19 = vector.broadcast %c7_i32 : i32 to vector<16x1xi32>
    %20 = arith.cmpi slt, %16, %19 : vector<16x1xi32>
    %c0 = arith.constant 0 : index
    %c0_4 = arith.constant 0 : index
    %21 = vector.load %arg0[%c0, %c0_4] : memref<16x256xf32, #tpu.memory_space<vmem>>, vector<16x256xf32>
    %c1_i32_5 = arith.constant 1 : i32
    %22 = tpu.dynamic_rotate %21 by %c1_i32_5 dim 0 : vector<16x256xf32>, i32 -> vector<16x256xf32>
    %cst = arith.constant 0.000000e+00 : f32
    %23 = vector.shape_cast %18 : vector<16x1xi1> to vector<16x1xi1>
    %24 = vector.broadcast %23 : vector<16x1xi1> to vector<16x256xi1>
    %25 = vector.broadcast %cst : f32 to vector<16x256xf32>
    %26 = arith.select %24, %22, %25 : vector<16x256xi1>, vector<16x256xf32>
    %c15_i32 = arith.constant 15 : i32
    %27 = tpu.dynamic_rotate %21 by %c15_i32 dim 0 : vector<16x256xf32>, i32 -> vector<16x256xf32>
    %cst_6 = arith.constant 0.000000e+00 : f32
    %28 = vector.shape_cast %20 : vector<16x1xi1> to vector<16x1xi1>
    %29 = vector.broadcast %28 : vector<16x1xi1> to vector<16x256xi1>
    %30 = vector.broadcast %cst_6 : f32 to vector<16x256xf32>
    %31 = arith.select %29, %27, %30 : vector<16x256xi1>, vector<16x256xf32>
    %32 = tpu.concatenate %26, %21, %31 in 1 : vector<16x256xf32>, vector<16x256xf32>, vector<16x256xf32> -> vector<16x768xf32>
    %33 = arith.truncf %32 : vector<16x768xf32> to vector<16x768xbf16>
    %c0_7 = arith.constant 0 : index
    %c0_8 = arith.constant 0 : index
    %34 = vector.load %arg1[%c0_7, %c0_8] : memref<768x256xbf16, #tpu.memory_space<vmem>>, vector<768x256xbf16>
    %cst_9 = arith.constant dense<0.000000e+00> : vector<16x256xf32>
    %35 = tpu.matmul %33, %34, %cst_9 {dimension_numbers = #tpu.dot_dimension_numbers<[1], [0], [0], [1], [0, 0, 1, 1], [], []>} : vector<16x768xbf16>, vector<768x256xbf16>, vector<16x256xf32> -> vector<16x256xf32>
    %c0_10 = arith.constant 0 : index
    %c0_11 = arith.constant 0 : index
    %36 = vector.load %arg2[%c0_10, %c0_11] : memref<1x256xf32, #tpu.memory_space<vmem>>, vector<1x256xf32>
    %37 = vector.broadcast %36 : vector<1x256xf32> to vector<16x256xf32>
    %38 = arith.addf %35, %37 : vector<16x256xf32>
    %cst_12 = arith.constant dense<0.000000e+00> : vector<256xf32>
    %39 = vector.multi_reduction <add>, %38, %cst_12 [0] : vector<16x256xf32> to vector<256xf32>
    %40 = vector.shape_cast %39 : vector<256xf32> to vector<1x256xf32>
    %c0_13 = arith.constant 0 : index
    %c0_14 = arith.constant 0 : index
    %41 = vector.load %arg5[%c0_13, %c0_14] : memref<256x4xf32, #tpu.memory_space<vmem>>, vector<256x4xf32>
    %cst_15 = arith.constant dense<0.000000e+00> : vector<1x4xf32>
    %42 = tpu.matmul %40, %41, %cst_15 {dimension_numbers = #tpu.dot_dimension_numbers<[1], [0], [0], [1], [0, 0, 1, 1], [], []>} : vector<1x256xf32>, vector<256x4xf32>, vector<1x4xf32> -> vector<1x4xf32>
    %43 = arith.mulf %38, %38 : vector<16x256xf32>
    %cst_16 = arith.constant dense<0.000000e+00> : vector<256xf32>
    %44 = vector.multi_reduction <add>, %43, %cst_16 [0] : vector<16x256xf32> to vector<256xf32>
    %45 = vector.shape_cast %44 : vector<256xf32> to vector<1x256xf32>
    %c0_17 = arith.constant 0 : index
    %c0_18 = arith.constant 0 : index
    %46 = vector.load %arg5[%c0_17, %c0_18] : memref<256x4xf32, #tpu.memory_space<vmem>>, vector<256x4xf32>
    %cst_19 = arith.constant dense<0.000000e+00> : vector<1x4xf32>
    %47 = tpu.matmul %45, %46, %cst_19 {dimension_numbers = #tpu.dot_dimension_numbers<[1], [0], [0], [1], [0, 0, 1, 1], [], []>} : vector<1x256xf32>, vector<256x4xf32>, vector<1x4xf32> -> vector<1x4xf32>
    %48 = arith.mulf %42, %42 : vector<1x4xf32>
    %49 = arith.subf %47, %48 : vector<1x4xf32>
    %c0_20 = arith.constant 0 : index
    %c0_21 = arith.constant 0 : index
    %50 = vector.load %arg3[%c0_20, %c0_21] : memref<1x4xf32, #tpu.memory_space<vmem>>, vector<1x4xf32>
    %cst_22 = arith.constant 9.99999974E-6 : f32
    %51 = vector.broadcast %cst_22 : f32 to vector<1x4xf32>
    %52 = arith.addf %49, %51 : vector<1x4xf32>
    %53 = math.rsqrt %52 : vector<1x4xf32>
    %54 = arith.mulf %50, %53 : vector<1x4xf32>
    %c0_23 = arith.constant 0 : index
    %c0_24 = arith.constant 0 : index
    %55 = vector.load %arg4[%c0_23, %c0_24] : memref<1x4xf32, #tpu.memory_space<vmem>>, vector<1x4xf32>
    %56 = arith.mulf %54, %42 : vector<1x4xf32>
    %57 = arith.subf %55, %56 : vector<1x4xf32>
    %c0_25 = arith.constant 0 : index
    %c0_26 = arith.constant 0 : index
    %58 = vector.load %arg6[%c0_25, %c0_26] : memref<4x256xf32, #tpu.memory_space<vmem>>, vector<4x256xf32>
    %cst_27 = arith.constant dense<0.000000e+00> : vector<1x256xf32>
    %59 = tpu.matmul %54, %58, %cst_27 {dimension_numbers = #tpu.dot_dimension_numbers<[1], [0], [0], [1], [0, 0, 1, 1], [], []>} : vector<1x4xf32>, vector<4x256xf32>, vector<1x256xf32> -> vector<1x256xf32>
    %c0_28 = arith.constant 0 : index
    %c0_29 = arith.constant 0 : index
    %60 = vector.load %arg6[%c0_28, %c0_29] : memref<4x256xf32, #tpu.memory_space<vmem>>, vector<4x256xf32>
    %cst_30 = arith.constant dense<0.000000e+00> : vector<1x256xf32>
    %61 = tpu.matmul %57, %60, %cst_30 {dimension_numbers = #tpu.dot_dimension_numbers<[1], [0], [0], [1], [0, 0, 1, 1], [], []>} : vector<1x4xf32>, vector<4x256xf32>, vector<1x256xf32> -> vector<1x256xf32>
    %62 = vector.broadcast %59 : vector<1x256xf32> to vector<16x256xf32>
    %63 = arith.mulf %38, %62 : vector<16x256xf32>
    %64 = vector.broadcast %61 : vector<1x256xf32> to vector<16x256xf32>
    %65 = arith.addf %63, %64 : vector<16x256xf32>
    %cst_31 = arith.constant 0.000000e+00 : f32
    %66 = vector.broadcast %cst_31 : f32 to vector<16x256xf32>
    %67 = arith.maximumf %65, %66 : vector<16x256xf32>
    %c1_i32_32 = arith.constant 1 : i32
    %68 = tpu.dynamic_rotate %67 by %c1_i32_32 dim 0 : vector<16x256xf32>, i32 -> vector<16x256xf32>
    %cst_33 = arith.constant 0.000000e+00 : f32
    %69 = vector.shape_cast %18 : vector<16x1xi1> to vector<16x1xi1>
    %70 = vector.broadcast %69 : vector<16x1xi1> to vector<16x256xi1>
    %71 = vector.broadcast %cst_33 : f32 to vector<16x256xf32>
    %72 = arith.select %70, %68, %71 : vector<16x256xi1>, vector<16x256xf32>
    %c15_i32_34 = arith.constant 15 : i32
    %73 = tpu.dynamic_rotate %67 by %c15_i32_34 dim 0 : vector<16x256xf32>, i32 -> vector<16x256xf32>
    %cst_35 = arith.constant 0.000000e+00 : f32
    %74 = vector.shape_cast %20 : vector<16x1xi1> to vector<16x1xi1>
    %75 = vector.broadcast %74 : vector<16x1xi1> to vector<16x256xi1>
    %76 = vector.broadcast %cst_35 : f32 to vector<16x256xf32>
    %77 = arith.select %75, %73, %76 : vector<16x256xi1>, vector<16x256xf32>
    %78 = tpu.concatenate %72, %67, %77 in 1 : vector<16x256xf32>, vector<16x256xf32>, vector<16x256xf32> -> vector<16x768xf32>
    %79 = arith.truncf %78 : vector<16x768xf32> to vector<16x768xbf16>
    %c0_36 = arith.constant 0 : index
    %c0_37 = arith.constant 0 : index
    %80 = vector.load %arg7[%c0_36, %c0_37] : memref<768x128xbf16, #tpu.memory_space<vmem>>, vector<768x128xbf16>
    %cst_38 = arith.constant dense<0.000000e+00> : vector<16x128xf32>
    %81 = tpu.matmul %79, %80, %cst_38 {dimension_numbers = #tpu.dot_dimension_numbers<[1], [0], [0], [1], [0, 0, 1, 1], [], []>} : vector<16x768xbf16>, vector<768x128xbf16>, vector<16x128xf32> -> vector<16x128xf32>
    %c0_39 = arith.constant 0 : index
    %c0_40 = arith.constant 0 : index
    %82 = vector.load %arg8[%c0_39, %c0_40] : memref<1x128xf32, #tpu.memory_space<vmem>>, vector<1x128xf32>
    %83 = vector.broadcast %82 : vector<1x128xf32> to vector<16x128xf32>
    %84 = arith.addf %81, %83 : vector<16x128xf32>
    %c1_i32_41 = arith.constant 1 : i32
    %85 = tpu.dynamic_rotate %84 by %c1_i32_41 dim 0 : vector<16x128xf32>, i32 -> vector<16x128xf32>
    %cst_42 = arith.constant 0.000000e+00 : f32
    %86 = vector.shape_cast %18 : vector<16x1xi1> to vector<16x1xi1>
    %87 = vector.broadcast %86 : vector<16x1xi1> to vector<16x128xi1>
    %88 = vector.broadcast %cst_42 : f32 to vector<16x128xf32>
    %89 = arith.select %87, %85, %88 : vector<16x128xi1>, vector<16x128xf32>
    %c15_i32_43 = arith.constant 15 : i32
    %90 = tpu.dynamic_rotate %84 by %c15_i32_43 dim 0 : vector<16x128xf32>, i32 -> vector<16x128xf32>
    %cst_44 = arith.constant 0.000000e+00 : f32
    %91 = vector.shape_cast %20 : vector<16x1xi1> to vector<16x1xi1>
    %92 = vector.broadcast %91 : vector<16x1xi1> to vector<16x128xi1>
    %93 = vector.broadcast %cst_44 : f32 to vector<16x128xf32>
    %94 = arith.select %92, %90, %93 : vector<16x128xi1>, vector<16x128xf32>
    %95 = tpu.concatenate %89, %84, %94 in 1 : vector<16x128xf32>, vector<16x128xf32>, vector<16x128xf32> -> vector<16x384xf32>
    %96 = arith.truncf %95 : vector<16x384xf32> to vector<16x384xbf16>
    %c0_45 = arith.constant 0 : index
    %c0_46 = arith.constant 0 : index
    %97 = vector.load %arg9[%c0_45, %c0_46] : memref<384x128xbf16, #tpu.memory_space<vmem>>, vector<384x128xbf16>
    %cst_47 = arith.constant dense<0.000000e+00> : vector<16x128xf32>
    %98 = tpu.matmul %96, %97, %cst_47 {dimension_numbers = #tpu.dot_dimension_numbers<[1], [0], [0], [1], [0, 0, 1, 1], [], []>} : vector<16x384xbf16>, vector<384x128xbf16>, vector<16x128xf32> -> vector<16x128xf32>
    %c0_48 = arith.constant 0 : index
    %c0_49 = arith.constant 0 : index
    %99 = vector.load %arg10[%c0_48, %c0_49] : memref<1x128xf32, #tpu.memory_space<vmem>>, vector<1x128xf32>
    %100 = vector.broadcast %99 : vector<1x128xf32> to vector<16x128xf32>
    %101 = arith.addf %98, %100 : vector<16x128xf32>
    %cst_50 = arith.constant 0.000000e+00 : f32
    %102 = vector.broadcast %cst_50 : f32 to vector<16x128xf32>
    %103 = arith.maximumf %101, %102 : vector<16x128xf32>
    %c1_i32_51 = arith.constant 1 : i32
    %104 = tpu.dynamic_rotate %103 by %c1_i32_51 dim 0 : vector<16x128xf32>, i32 -> vector<16x128xf32>
    %cst_52 = arith.constant 0.000000e+00 : f32
    %105 = vector.shape_cast %18 : vector<16x1xi1> to vector<16x1xi1>
    %106 = vector.broadcast %105 : vector<16x1xi1> to vector<16x128xi1>
    %107 = vector.broadcast %cst_52 : f32 to vector<16x128xf32>
    %108 = arith.select %106, %104, %107 : vector<16x128xi1>, vector<16x128xf32>
    %c15_i32_53 = arith.constant 15 : i32
    %109 = tpu.dynamic_rotate %103 by %c15_i32_53 dim 0 : vector<16x128xf32>, i32 -> vector<16x128xf32>
    %cst_54 = arith.constant 0.000000e+00 : f32
    %110 = vector.shape_cast %20 : vector<16x1xi1> to vector<16x1xi1>
    %111 = vector.broadcast %110 : vector<16x1xi1> to vector<16x128xi1>
    %112 = vector.broadcast %cst_54 : f32 to vector<16x128xf32>
    %113 = arith.select %111, %109, %112 : vector<16x128xi1>, vector<16x128xf32>
    %114 = tpu.concatenate %108, %103, %113 in 1 : vector<16x128xf32>, vector<16x128xf32>, vector<16x128xf32> -> vector<16x384xf32>
    %115 = arith.truncf %114 : vector<16x384xf32> to vector<16x384xbf16>
    %c0_55 = arith.constant 0 : index
    %c0_56 = arith.constant 0 : index
    %116 = vector.load %arg11[%c0_55, %c0_56] : memref<384x128xbf16, #tpu.memory_space<vmem>>, vector<384x128xbf16>
    %cst_57 = arith.constant dense<0.000000e+00> : vector<16x128xf32>
    %117 = tpu.matmul %115, %116, %cst_57 {dimension_numbers = #tpu.dot_dimension_numbers<[1], [0], [0], [1], [0, 0, 1, 1], [], []>} : vector<16x384xbf16>, vector<384x128xbf16>, vector<16x128xf32> -> vector<16x128xf32>
    %c0_58 = arith.constant 0 : index
    %c0_59 = arith.constant 0 : index
    %118 = vector.load %arg12[%c0_58, %c0_59] : memref<1x128xf32, #tpu.memory_space<vmem>>, vector<1x128xf32>
    %119 = vector.broadcast %118 : vector<1x128xf32> to vector<16x128xf32>
    %120 = arith.addf %117, %119 : vector<16x128xf32>
    %121 = arith.addf %84, %120 : vector<16x128xf32>
    %c0_60 = arith.constant 0 : index
    %c0_61 = arith.constant 0 : index
    %122 = vector.load %arg13[%c0_60, %c0_61] : memref<16x128xf32, #tpu.memory_space<vmem>>, vector<16x128xf32>
    tpu.vector_store %arg13[%c0_60, %c0_61], %121 {strides = array<i32>} : memref<16x128xf32, #tpu.memory_space<vmem>>, vector<16x128xf32>,
    return
  }
}

</mosaic_0001>

<bundles_post_ra>
// kernel: br_forward.1
= control target key start
LH: loop header
LB: loop body
LE: loop exit
PB: predicated region body
PF: predicated region fallthrough
CT: control target
= control target key end

     0   :  { %v45_v29 = vlaneseq  ;;  %vm1057_vm8 = vcmask 1043456   ;;  %vm1053_vm9 = vcmask 31744   ;;  %vm3102_vm10 = vmmov 0   ;;  %s4209_s1 = inlined_call_operand.vmem [shape: bf16[768,256], index: 1, kind: input, shape index: {}]   ;;  %s4210_s0 = inlined_call_operand.vmem [shape: f32[16,256], index: 0, kind: input, shape index: {}]   ;;  %s4211_s5 = inlined_call_operand.vmem [shape: f32[256,4], index: 5, kind: input, shape index: {}]   ;;  %s4212_s2 = inlined_call_operand.vmem [shape: f32[1,256], index: 2, kind: input, shape index: {}]   ;;  %s4213_s6 = inlined_call_operand.vmem [shape: f32[4,256], index: 6, kind: input, shape index: {}]   ;;  %s4214_s7 = inlined_call_operand.vmem [shape: bf16[768,128], index: 7, kind: input, shape index: {}]   ;;  %s4215_s3 = inlined_call_operand.vmem [shape: f32[1,4], index: 3, kind: input, shape index: {}]   ;;  %s4216_s4 = inlined_call_operand.vmem [shape: f32[1,4], index: 4, kind: input, shape index: {}]   ;;  %s4217_s9 = inlined_call_operand.vmem [shape: bf16[384,128], index: 9, kind: input, shape index: {}]   ;;  %s4218_s11 = inlined_call_operand.vmem [shape: bf16[384,128], index: 11, kind: input, shape index: {}]   ;;  %s4219_s8 = inlined_call_operand.vmem [shape: f32[1,128], index: 8, kind: input, shape index: {}]   ;;  %s4220_s10 = inlined_call_operand.vmem [shape: f32[1,128], index: 10, kind: input, shape index: {}]   ;;  %s4221_s12 = inlined_call_operand.vmem [shape: f32[1,128], index: 12, kind: input, shape index: {}]   ;;  %s4222_s13 = inlined_call_operand.vmem [shape: f32[16,128], index: 13, kind: output, shape index: {}]  }
   0x1   :  { %v2858_v0 = vld [vmem:[%s4209_s1 + $0x74] ss:$8 sps:$4 sm:$0xff]   ;;  %v2860_v1 = vld [vmem:[%s4209_s1 + $0x70] ss:$8 sps:$4 sm:$0xff]   ;;  %v2864_v4 = vld [vmem:[%s4209_s1 + $0x64] ss:$8 sps:$4 sm:$0xff]  }
   0x2   :  { %708 = vmatprep.subr.bf16.mxu0 %v2858_v0  ;;  %v2861_v2 = vld [vmem:[%s4209_s1 + $0x174] ss:$8 sps:$4 sm:$0xff]   ;;  %v2863_v3 = vld [vmem:[%s4209_s1 + $0x170] ss:$8 sps:$4 sm:$0xff]   ;;  %v2866_v5 = vld [vmem:[%s4209_s1 + $0x60] ss:$8 sps:$4 sm:$0xff]  }
   0x3   :  { %709 = vmatpush1.bf16.msra.mxu0 %v2860_v1  ;;  %751 = vmatprep.subr.bf16.mxu1 %v2861_v2  ;;  %v2867_v6 = vld [vmem:[%s4209_s1 + $0x164] ss:$8 sps:$4 sm:$0xff]   ;;  %v2869_v7 = vld [vmem:[%s4209_s1 + $0x160] ss:$8 sps:$4 sm:$0xff]   ;;  %v2870_v8 = vld [vmem:[%s4209_s1 + $0x54] ss:$8 sps:$4 sm:$0xff]  }
   0x4   :  { %752 = vmatpush1.bf16.msra.mxu1 %v2863_v3  ;;  %710 = vmatprep.subr.bf16.mxu0 %v2864_v4  ;;  %v2872_v9 = vld [vmem:[%s4209_s1 + $0x50] ss:$8 sps:$4 sm:$0xff]   ;;  %v2873_v10 = vld [vmem:[%s4209_s1 + $0x154] ss:$8 sps:$4 sm:$0xff]   ;;  %v2876_v11 = vld [vmem:[%s4209_s1 + $0x44] ss:$8 sps:$4 sm:$0xff]  }
   0x5   :  { %753 = vmatprep.subr.bf16.mxu1 %v2867_v6  ;;  %v2875_v12 = vld [vmem:[%s4209_s1 + $0x150] ss:$8 sps:$4 sm:$0xff]   ;;  %v2879_v13 = vld [vmem:[%s4209_s1 + $0x144] ss:$8 sps:$4 sm:$0xff]   ;;  %v2878_v14 = vld [vmem:[%s4209_s1 + $0x40] ss:$8 sps:$4 sm:$0xff]  }
   0x6   :  { %v2882_v15 = vld [vmem:[%s4209_s1 + $0x34] ss:$8 sps:$4 sm:$0xff]   ;;  %v2881_v16 = vld [vmem:[%s4209_s1 + $0x140] ss:$8 sps:$4 sm:$0xff]   ;;  %v2884_v18 = vld [vmem:[%s4209_s1 + $0x30] ss:$8 sps:$4 sm:$0xff]  }
   0x7   :  { %711 = vmatpush1.bf16.msra.mxu0 %v2866_v5  ;;  %v2885_v17 = vld [vmem:[%s4209_s1 + $0x134] ss:$8 sps:$4 sm:$0xff]   ;;  %v2888_v19 = vld [vmem:[%s4209_s1 + $0x24] ss:$8 sps:$4 sm:$0xff]   ;;  %v2887_v20 = vld [vmem:[%s4209_s1 + $0x130] ss:$8 sps:$4 sm:$0xff]  }
   0x8   :  { %712 = vmatprep.subr.bf16.mxu0 %v2870_v8  ;;  %754 = vmatpush1.bf16.msra.mxu1 %v2869_v7  ;;  %v2891_v21 = vld [vmem:[%s4209_s1 + $0x124] ss:$8 sps:$4 sm:$0xff]   ;;  %v2890_v22 = vld [vmem:[%s4209_s1 + $0x20] ss:$8 sps:$4 sm:$0xff]   ;;  %v2894_v23 = vld [vmem:[%s4209_s1 + $0x14] ss:$8 sps:$4 sm:$0xff]  }
   0x9   :  { %755 = vmatprep.subr.bf16.mxu1 %v2873_v10  ;;  %v2893_v24 = vld [vmem:[%s4209_s1 + $0x120] ss:$8 sps:$4 sm:$0xff]   ;;  %v2897_v25 = vld [vmem:[%s4209_s1 + $0x114] ss:$8 sps:$4 sm:$0xff]   ;;  %v2896_v26 = vld [vmem:[%s4209_s1 + $0x10] ss:$8 sps:$4 sm:$0xff]  }
   0xa   :  { %v2900_v27 = vld [vmem:[%s4209_s1 + $0x4] ss:$8 sps:$4 sm:$0xff]   ;;  %v2899_v28 = vld [vmem:[%s4209_s1 + $0x110] ss:$8 sps:$4 sm:$0xff]   ;;  %v2902_v31 = vld [vmem:[%s4209_s1] ss:$8 sps:$4 sm:$0xff]  }
   0xb   :  { %713 = vmatpush1.bf16.msra.mxu0 %v2872_v9  ;;  %v2903_v30 = vld [vmem:[%s4209_s1 + $0x104] ss:$8 sps:$4 sm:$0xff]   ;;  %v2906_v32 = vld [vmem:[%s4209_s1 + $0xf4] ss:$8 sps:$4 sm:$0xff]   ;;  %v2905_v33 = vld [vmem:[%s4209_s1 + $0x100] ss:$8 sps:$4 sm:$0xff]  }
   0xc   :  { %714 = vmatprep.subr.bf16.mxu0 %v2876_v11  ;;  %756 = vmatpush1.bf16.msra.mxu1 %v2875_v12  ;;  %v3272_v34 = vshrl.u32 %v45_v29, 7  ;;  %v2909_v35 = vld [vmem:[%s4209_s1 + $0x1f4] ss:$8 sps:$4 sm:$0xff]   ;;  %v2908_v36 = vld [vmem:[%s4209_s1 + $0xf0] ss:$8 sps:$4 sm:$0xff]   ;;  %v3325_v51 = vld [vmem:[%s4210_s0 + $0x8] sm:$0xff] }
   0xd   :  { %757 = vmatprep.subr.bf16.mxu1 %v2879_v13  ;;  %v2912_v37 = vld [vmem:[%s4209_s1 + $0xe4] ss:$8 sps:$4 sm:$0xff]   ;;  %v2911_v38 = vld [vmem:[%s4209_s1 + $0x1f0] ss:$8 sps:$4 sm:$0xff]   ;;  %v2914_v41 = vld [vmem:[%s4209_s1 + $0xe0] ss:$8 sps:$4 sm:$0xff]  }
   0xe   :  { %v3287_v39 = vadd.s32 8, %v3272_v34  ;;  %v2915_v40 = vld [vmem:[%s4209_s1 + $0x1e4] ss:$8 sps:$4 sm:$0xff]   ;;  %v2918_v42 = vld [vmem:[%s4209_s1 + $0xd4] ss:$8 sps:$4 sm:$0xff]   ;;  %v52_v44 = vand.u32 7, %v3272_v34 }
   0xf   :  { %715 = vmatpush1.bf16.msra.mxu0 %v2878_v14  ;;  %v2917_v43 = vld [vmem:[%s4209_s1 + $0x1e0] ss:$8 sps:$4 sm:$0xff]   ;;  %v2921_v46 = vld [vmem:[%s4209_s1 + $0x1d4] ss:$8 sps:$4 sm:$0xff]   ;;  %v2920_v47 = vld [vmem:[%s4209_s1 + $0xd0] ss:$8 sps:$4 sm:$0xff]  }
  0x10   :  { %716 = vmatprep.subr.bf16.mxu0 %v2882_v15  ;;  %758 = vmatpush1.bf16.msra.mxu1 %v2881_v16  ;;  %v59_v45 = vand.u32 7, %v3287_v39  ;;  %v2924_v48 = vld [vmem:[%s4209_s1 + $0xc4] ss:$8 sps:$4 sm:$0xff]   ;;  %v2923_v49 = vld [vmem:[%s4209_s1 + $0x1d0] ss:$8 sps:$4 sm:$0xff]   ;;  %vm72_vm0 = vcmp.gt.s32.totalorder %v52_v44, 0 }
  0x11   :  { %759 = vmatprep.subr.bf16.mxu1 %v2885_v17  ;;  %v2927_v50 = vld [vmem:[%s4209_s1 + $0x1c4] ss:$8 sps:$4 sm:$0xff]   ;;  %v3330_v52 = vld [vmem:[%s4210_s0 + $0x18] sm:$0xff]  ;;  %vm84_vm2 = vcmp.lt.s32.totalorder %v3272_v34, 1  ;;  %v2926_v53 = vld [vmem:[%s4209_s1 + $0xc0] ss:$8 sps:$4 sm:$0xff]  }
  0x12   :  { %vm73_vm1 = vcmp.gt.s32.totalorder %v59_v45, 0  ;;  %v2929_v54 = vld [vmem:[%s4209_s1 + $0x1c0] ss:$8 sps:$4 sm:$0xff]   ;;  %v81_v55 = vrot.slane %v3325_v51, 7  ;;  %v83_v56 = vrot.slane %v3330_v52, 7  ;;  %v117_v59 = vpack.c.bf16 %v3330_v52, %v3325_v51  ;;  %v3365_v1 = vld [vmem:[%s4210_s0 + $0x10] sm:$0xff] }
  0x13   :  { %717 = vmatpush1.bf16.msra.mxu0 %v2884_v18  ;;  %v2930_v57 = vld [vmem:[%s4209_s1 + $0xb4] ss:$8 sps:$4 sm:$0xff]   ;;  %vm3344_vm3 = vmpackc.low %vm73_vm1, %vm72_vm0  ;;  %v3357_v62 = vld [vmem:[%s4210_s0] sm:$0xff]  ;;  %vm101_vm4 = vcmp.lt.s32.totalorder %v3272_v34, 7  ;;  %v99_v4 = vrot.slane %v3365_v1, 1  ;;  %v82_v17 = vrot.slane %v3365_v1, 7 }
  0x14   :  { %718 = vmatprep.subr.bf16.mxu0 %v2888_v19  ;;  %760 = vmatpush1.bf16.msra.mxu1 %v2887_v20  ;;  %v86_v60 = vsel %vm84_vm2, %v81_v55, %v83_v56  ;;  %v88_v61 = vsel %vm84_vm2, %v83_v56, %v81_v55  ;;  %v2933_v63 = vld [vmem:[%s4209_s1 + $0x1b4] ss:$8 sps:$4 sm:$0xff]   ;;  %v97_v2 = vrot.slane %v3357_v62, 1  ;;  %v2932_v3 = vld [vmem:[%s4209_s1 + $0xb0] ss:$8 sps:$4 sm:$0xff]   ;;  %v80_v16 = vrot.slane %v3357_v62, 7 }
  0x15   :  { %761 = vmatprep.subr.bf16.mxu1 %v2891_v21  ;;  %v2478_v0 = vpack.c.bf16 %v86_v60, %v88_v61  ;;  %783 = vmatprep.mubr.bf16.mxu1 %v117_v59  ;;  %v2936_v5 = vld [vmem:[%s4209_s1 + $0xa4] ss:$8 sps:$4 sm:$0xff]   ;;  %v2935_v6 = vld [vmem:[%s4209_s1 + $0x1b0] ss:$8 sps:$4 sm:$0xff]   ;;  %v2938_v11 = vld [vmem:[%s4209_s1 + $0xa0] ss:$8 sps:$4 sm:$0xff]  }
  0x16   :  { %v3383_v7 = vsel %vm101_vm4, %v97_v2, %v99_v4  ;;  %v3387_v8 = vsel %vm101_vm4, %v99_v4, %v97_v2  ;;  %v2939_v9 = vld [vmem:[%s4209_s1 + $0x1a4] ss:$8 sps:$4 sm:$0xff]   ;;  %v2942_v12 = vld [vmem:[%s4209_s1 + $0x94] ss:$8 sps:$4 sm:$0xff]   ;;  %v2941_v13 = vld [vmem:[%s4209_s1 + $0x1a0] ss:$8 sps:$4 sm:$0xff]  }
  0x17   :  { %719 = vmatpush1.bf16.msra.mxu0 %v2890_v22  ;;  %2479 = vmatprep.mubr.msk.bf16.mxu0 %vm3344_vm3, %v2478_v0  ;;  %v2487_v10 = vpack.c.bf16 %v3387_v8, %v3383_v7  ;;  %v2945_v14 = vld [vmem:[%s4209_s1 + $0x194] ss:$8 sps:$4 sm:$0xff]   ;;  %v2944_v15 = vld [vmem:[%s4209_s1 + $0x90] ss:$8 sps:$4 sm:$0xff]   ;;  %v2948_v18 = vld [vmem:[%s4209_s1 + $0x84] ss:$8 sps:$4 sm:$0xff]  }
  0x18   :  { %720 = vmatprep.subr.bf16.mxu0 %v2894_v23  ;;  %762 = vmatpush1.bf16.msra.mxu1 %v2893_v24  ;;  %v98_v19 = vrot.slane %v3325_v51, 1  ;;  %v100_v20 = vrot.slane %v3330_v52, 1  ;;  %v2947_v21 = vld [vmem:[%s4209_s1 + $0x190] ss:$8 sps:$4 sm:$0xff]   ;;  %v2951_v22 = vld [vmem:[%s4209_s1 + $0x184] ss:$8 sps:$4 sm:$0xff]   ;;  %v85_v24 = vsel %vm84_vm2, %v80_v16, %v82_v17 }
  0x19   :  { %763 = vmatprep.subr.bf16.mxu1 %v2897_v25  ;;  %v2950_v23 = vld [vmem:[%s4209_s1 + $0x80] ss:$8 sps:$4 sm:$0xff]   ;;  %v87_v25 = vsel %vm84_vm2, %v82_v17, %v80_v16  ;;  %vm74_vm5 = vcmp.lt.s32.totalorder %v52_v44, 7  ;;  %vm75_vm6 = vcmp.lt.s32.totalorder %v59_v45, 7  ;;  %v2960_v39 = vld [vmem:[%s4209_s1 + $0x250] ss:$8 sps:$4 sm:$0xff]  }
  0x1a   :  { %v2953_v29 = vld [vmem:[%s4209_s1 + $0x180] ss:$8 sps:$4 sm:$0xff]   ;;  %vm3453_vm7 = vmpackc.low %vm75_vm6, %vm74_vm5  ;;  %v2971_v44 = vld [vmem:[%s4209_s1 + $0x224] ss:$8 sps:$4 sm:$0xff]  }
  0x1b   :  { %721 = vmatpush1.bf16.msra.mxu0 %v2896_v26  ;;  %v2956_v26 = vld [vmem:[%s4209_s1 + $0x274] ss:$8 sps:$4 sm:$0xff]   ;;  %v2969_v45 = vld [vmem:[%s4209_s1 + $0x220] ss:$8 sps:$4 sm:$0xff]   ;;  %v2978_v51 = vld [vmem:[%s4209_s1 + $0x2f0] ss:$8 sps:$4 sm:$0xff]  }
  0x1c   :  { %722 = vmatprep.subr.bf16.mxu0 %v2900_v27  ;;  %764 = vmatpush1.bf16.msra.mxu1 %v2899_v28  ;;  %v103_v27 = vsel %vm101_vm4, %v98_v19, %v100_v20  ;;  %v105_v28 = vsel %vm101_vm4, %v100_v20, %v98_v19  ;;  %v2983_v52 = vld [vmem:[%s4209_s1 + $0x2e4] ss:$8 sps:$4 sm:$0xff]   ;;  %v2984_v55 = vld [vmem:[%s4209_s1 + $0x2d0] ss:$8 sps:$4 sm:$0xff]   ;;  %v2992_v59 = vld [vmem:[%s4209_s1 + $0x2b4] ss:$8 sps:$4 sm:$0xff]  }
  0x1d   :  { %765 = vmatprep.subr.bf16.mxu1 %v2903_v30  ;;  %v2481_v30 = vpack.c.bf16 %v85_v24, %v87_v25  ;;  %v2989_v56 = vld [vmem:[%s4209_s1 + $0x2c4] ss:$8 sps:$4 sm:$0xff]   ;;  %v2990_v60 = vld [vmem:[%s4209_s1 + $0x2b0] ss:$8 sps:$4 sm:$0xff]   ;;  %v2999_v2 = vld [vmem:[%s4209_s1 + $0x280] ss:$8 sps:$4 sm:$0xff]  }
  0x1e   :  { %v2995_v61 = vld [vmem:[%s4209_s1 + $0x2a4] ss:$8 sps:$4 sm:$0xff]   ;;  %v2996_v0 = vld [vmem:[%s4209_s1 + $0x290] ss:$8 sps:$4 sm:$0xff]  }
  0x1f   :  { %723 = vmatpush1.bf16.msra.mxu0 %v2902_v31  ;;  %v2954_v31 = vld [vmem:[%s4209_s1 + $0x270] ss:$8 sps:$4 sm:$0xff]   ;;  %v3576_v7 = vld [vmem:[%s4211_s5 + $0xe8] sm:$0xff]  ;;  %v3638_v17 = vld [vmem:[%s4211_s5 + $0xc0] sm:$0xff] }
  0x20   :  { %724 = vmatprep.subr.bf16.mxu0 %v2906_v32  ;;  %766 = vmatpush1.bf16.msra.mxu1 %v2905_v33  ;;  %v2484_v32 = vpack.c.bf16 %v105_v28, %v103_v27  ;;  %v116_v33 = vpack.c.bf16 %v3365_v1, %v3357_v62  ;;  %v2993_v62 = vld [vmem:[%s4209_s1 + $0x2a0] ss:$8 sps:$4 sm:$0xff]   ;;  %v3001_v1 = vld [vmem:[%s4209_s1 + $0x284] ss:$8 sps:$4 sm:$0xff]   ;;  %v3559_v4 = vld [vmem:[%s4211_s5 + $0x78] sm:$0xff] }
  0x21   :  { %767 = vmatprep.subr.bf16.mxu1 %v2909_v35  ;;  %v2959_v35 = vld [vmem:[%s4209_s1 + $0x264] ss:$8 sps:$4 sm:$0xff]   ;;  %v3650_v19 = vld [vmem:[%s4211_s5 + $0xb8] sm:$0xff] }
  0x22   :  { %v3582_v8 = vld [vmem:[%s4211_s5 + $0x68] sm:$0xff]  ;;  %v3656_v20 = vld [vmem:[%s4211_s5 + $0x38] sm:$0xff]  ;;  %v3686_v25 = vld [vmem:[%s4211_s5 + $0xa0] sm:$0xff] }
  0x23   :  { %725 = vmatpush2.bf16.msra.mxu0 %v2908_v36  ;;  %v3632_v16 = vld [vmem:[%s4211_s5 + $0x48] sm:$0xff]  ;;  %v3698_v27 = vld [vmem:[%s4211_s5 + $0x98] sm:$0xff] }
  0x24   :  { %726 = vmatprep.subr.bf16.mxu0 %v2912_v37  ;;  %768 = vmatpush2.bf16.msra.mxu1 %v2911_v38  ;;  %v2957_v37 = vld [vmem:[%s4209_s1 + $0x260] ss:$8 sps:$4 sm:$0xff]   ;;  %v2962_v38 = vld [vmem:[%s4209_s1 + $0x254] ss:$8 sps:$4 sm:$0xff]  }
  0x25   :  { %769 = vmatprep.subr.bf16.mxu1 %v2915_v40  ;;  %v2965_v40 = vld [vmem:[%s4209_s1 + $0x244] ss:$8 sps:$4 sm:$0xff]   ;;  %v3704_v28 = vld [vmem:[%s4211_s5 + $0x18] sm:$0xff] }
  0x26   :  { %v3680_v24 = vld [vmem:[%s4211_s5 + $0x28] sm:$0xff] }
  0x27   :  { %727 = vmatpush2.bf16.msra.mxu0 %v2914_v41  ;;  %v2963_v41 = vld [vmem:[%s4209_s1 + $0x240] ss:$8 sps:$4 sm:$0xff]  }
  0x28   :  { %728 = vmatprep.subr.bf16.mxu0 %v2918_v42  ;;  %770 = vmatpush2.bf16.msra.mxu1 %v2917_v43  ;;  %v2968_v42 = vld [vmem:[%s4209_s1 + $0x234] ss:$8 sps:$4 sm:$0xff]   ;;  %v2966_v43 = vld [vmem:[%s4209_s1 + $0x230] ss:$8 sps:$4 sm:$0xff]  }
  0x29   :  { %771 = vmatprep.subr.bf16.mxu1 %v2921_v46  ;;  %v2974_v46 = vld [vmem:[%s4209_s1 + $0x214] ss:$8 sps:$4 sm:$0xff]  }
  0x2b   :  { %729 = vmatpush2.bf16.msra.mxu0 %v2920_v47  ;;  %v2972_v47 = vld [vmem:[%s4209_s1 + $0x210] ss:$8 sps:$4 sm:$0xff]  }
  0x2c   :  { %730 = vmatprep.subr.bf16.mxu0 %v2924_v48  ;;  %772 = vmatpush2.bf16.msra.mxu1 %v2923_v49  ;;  %v2977_v48 = vld [vmem:[%s4209_s1 + $0x204] ss:$8 sps:$4 sm:$0xff]   ;;  %v2975_v49 = vld [vmem:[%s4209_s1 + $0x200] ss:$8 sps:$4 sm:$0xff]  }
  0x2d   :  { %773 = vmatprep.subr.bf16.mxu1 %v2927_v50  ;;  %v2980_v50 = vld [vmem:[%s4209_s1 + $0x2f4] ss:$8 sps:$4 sm:$0xff]  }
  0x2f   :  { %731 = vmatpush2.bf16.msra.mxu0 %v2926_v53  ;;  %v2981_v53 = vld [vmem:[%s4209_s1 + $0x2e0] ss:$8 sps:$4 sm:$0xff]  }
  0x30   :  { %732 = vmatprep.subr.bf16.mxu0 %v2930_v57  ;;  %774 = vmatpush2.bf16.msra.mxu1 %v2929_v54  ;;  %v2986_v54 = vld [vmem:[%s4209_s1 + $0x2d4] ss:$8 sps:$4 sm:$0xff]   ;;  %v2987_v57 = vld [vmem:[%s4209_s1 + $0x2c0] ss:$8 sps:$4 sm:$0xff]  }
  0x31   :  { %775 = vmatprep.subr.bf16.mxu1 %v2933_v63  ;;  %v2998_v63 = vld [vmem:[%s4209_s1 + $0x294] ss:$8 sps:$4 sm:$0xff]  }
  0x33   :  { %733 = vmatpush2.bf16.msra.mxu0 %v2932_v3  ;;  %v3554_v3 = vld [vmem:[%s4211_s5 + $0xf8] sm:$0xff] }
  0x34   :  { %734 = vmatprep.subr.bf16.mxu0 %v2936_v5  ;;  %776 = vmatpush2.bf16.msra.mxu1 %v2935_v6  ;;  %v3564_v5 = vld [vmem:[%s4211_s5 + $0xf0] sm:$0xff] }
  0x35   :  { %777 = vmatprep.subr.bf16.mxu1 %v2939_v9  ;;  %v3570_v6 = vld [vmem:[%s4211_s5 + $0x70] sm:$0xff]  ;;  %v3588_v9 = vld [vmem:[%s4211_s5 + $0xe0] sm:$0xff] }
  0x37   :  { %735 = vmatpush2.bf16.msra.mxu0 %v2938_v11  ;;  %v3600_v11 = vld [vmem:[%s4211_s5 + $0xd8] sm:$0xff] }
  0x38   :  { %736 = vmatprep.subr.bf16.mxu0 %v2942_v12  ;;  %778 = vmatpush2.bf16.msra.mxu1 %v2941_v13  ;;  %v3608_v12 = vld [vmem:[%s4211_s5 + $0x58] sm:$0xff]  ;;  %v3614_v13 = vld [vmem:[%s4211_s5 + $0xd0] sm:$0xff] }
  0x39   :  { %779 = vmatprep.subr.bf16.mxu1 %v2945_v14  ;;  %v3620_v14 = vld [vmem:[%s4211_s5 + $0x50] sm:$0xff] }
  0x3b   :  { %737 = vmatpush2.bf16.msra.mxu0 %v2944_v15  ;;  %v3626_v15 = vld [vmem:[%s4211_s5 + $0xc8] sm:$0xff] }
  0x3c   :  { %738 = vmatprep.subr.bf16.mxu0 %v2948_v18  ;;  %780 = vmatpush2.bf16.msra.mxu1 %v2947_v21  ;;  %v3644_v18 = vld [vmem:[%s4211_s5 + $0x40] sm:$0xff]  ;;  %v3662_v21 = vld [vmem:[%s4211_s5 + $0xb0] sm:$0xff] }
  0x3d   :  { %781 = vmatprep.subr.bf16.mxu1 %v2951_v22  ;;  %v3668_v22 = vld [vmem:[%s4211_s5 + $0x30] sm:$0xff] }
  0x3f   :  { %739 = vmatpush2.bf16.msra.mxu0 %v2950_v23  ;;  %v3674_v23 = vld [vmem:[%s4211_s5 + $0xa8] sm:$0xff] }
  0x40   :  { %794 = vmatprep.subr.bf16.mxu0 %v2956_v26  ;;  %782 = vmatpush2.bf16.msra.mxu1 %v2953_v29  ;;  %v3692_v26 = vld [vmem:[%s4211_s5 + $0x20] sm:$0xff]  ;;  %v3709_v29 = vld [vmem:[%s4211_s5 + $0x90] sm:$0xff] }
  0x41   :  { %2618 = vmatprep.subr.mxu1 %v3554_v3 }
  0x42   :  { %2482 = vmatmul.mubr.msk.bf16.vlgmr.msra.gmra.mxu0 %vm3344_vm3, %v2481_v30  ;;  %v3714_v30 = vld [vmem:[%s4211_s5 + $0x10] sm:$0xff] }
  0x43   :  { %795 = vmatpush1.bf16.msra.mxu0 %v2954_v31  ;;  %2485 = vmatprep.mubr.msk.bf16.mxu0 %vm3453_vm7, %v2484_v32  ;;  %v3720_v31 = vld [vmem:[%s4211_s5 + $0x88] sm:$0xff] }
  0x44   :  { %784 = vmatmul.mubr.bf16.vlgmr.msra.gmra.mxu1 %v116_v33  ;;  %796 = vmatprep.subr.bf16.mxu0 %v2959_v35  ;;  %v3726_v32 = vld [vmem:[%s4211_s5 + $0x8] sm:$0xff]  ;;  %v3732_v33 = vld [vmem:[%s4211_s5 + $0x80] sm:$0xff] }
  0x45   :  { %2619 = vmatpush3.msra.mxu1 %v3559_v4  ;;  %v3738_v35 = vld [vmem:[%s4211_s5] sm:$0xff] }
  0x46   :  { %2620 = vmatprep.subr.mxu1 %v3564_v5 }
  0x47   :  { %797 = vmatpush1.bf16.msra.mxu0 %v2957_v37  ;;  %2621 = vmatpush3.msra.mxu1 %v3570_v6 }
  0x48   :  { %798 = vmatprep.subr.bf16.mxu0 %v2962_v38  ;;  %2622 = vmatprep.subr.mxu1 %v3576_v7 }
  0x49   :  { %2623 = vmatpush3.msra.mxu1 %v3582_v8 }
  0x4a   :  { %2624 = vmatprep.subr.mxu1 %v3588_v9 }
  0x4b   :  { %799 = vmatpush1.bf16.msra.mxu0 %v2960_v39 }
  0x4c   :  { %800 = vmatprep.subr.bf16.mxu0 %v2965_v40  ;;  %v3745_v40 = vsub.s32 0, %v3272_v34 }
  0x4f   :  { %801 = vmatpush1.bf16.msra.mxu0 %v2963_v41  ;;  %v224_v41 = vsub.s32 1, %v3272_v34 }
  0x50   :  { %802 = vmatprep.subr.bf16.mxu0 %v2968_v42  ;;  %v216_v42 = vld [vmem:[%s4212_s2] sm:$0x3] }
  0x53   :  { %803 = vmatpush1.bf16.msra.mxu0 %v2966_v43 }
  0x54   :  { %804 = vmatprep.subr.bf16.mxu0 %v2971_v44 }
  0x57   :  { %805 = vmatpush1.bf16.msra.mxu0 %v2969_v45  ;;  %v221_v45 = vrot.slane %v216_v42, %v3745_v40 }
  0x58   :  { %806 = vmatprep.subr.bf16.mxu0 %v2974_v46  ;;  %v225_v46 = vrot.slane %v216_v42, %v224_v41 }
  0x5b   :  { %807 = vmatpush1.bf16.msra.mxu0 %v2972_v47 }
  0x5c   :  { %808 = vmatprep.subr.bf16.mxu0 %v2977_v48 }
  0x5f   :  { %809 = vmatpush1.bf16.msra.mxu0 %v2975_v49 }
  0x60   :  { %810 = vmatprep.subr.bf16.mxu0 %v2980_v50 }
  0x63   :  { %811 = vmatpush2.bf16.msra.mxu0 %v2978_v51 }
  0x64   :  { %812 = vmatprep.subr.bf16.mxu0 %v2983_v52 }
  0x67   :  { %813 = vmatpush2.bf16.msra.mxu0 %v2981_v53 }
  0x68   :  { %814 = vmatprep.subr.bf16.mxu0 %v2986_v54 }
  0x6b   :  { %815 = vmatpush2.bf16.msra.mxu0 %v2984_v55 }
  0x6c   :  { %816 = vmatprep.subr.bf16.mxu0 %v2989_v56 }
  0x6f   :  { %817 = vmatpush2.bf16.msra.mxu0 %v2987_v57 }
  0x70   :  { %818 = vmatprep.subr.bf16.mxu0 %v2992_v59 }
  0x73   :  { %819 = vmatpush2.bf16.msra.mxu0 %v2990_v60 }
  0x74   :  { %820 = vmatprep.subr.bf16.mxu0 %v2995_v61 }
  0x77   :  { %821 = vmatpush2.bf16.msra.mxu0 %v2993_v62 }
  0x78   :  { %822 = vmatprep.subr.bf16.mxu0 %v2998_v63 }
  0x7b   :  { %823 = vmatpush2.bf16.msra.mxu0 %v2996_v0 }
  0x7c   :  { %824 = vmatprep.subr.bf16.mxu0 %v3001_v1 }
  0x7f   :  { %825 = vmatpush2.bf16.msra.mxu0 %v2999_v2 }
  0x82   :  { %2488 = vmatmul.mubr.msk.bf16.vlgmr.msra.gmra.mxu0 %vm3453_vm7, %v2487_v10  ;;  %v3594_v10 = vld [vmem:[%s4211_s5 + $0x60] sm:$0xff] }
  0x83   :  { %2625 = vmatpush3.msra.mxu1 %v3594_v10 }
  0x84   :  { %2626 = vmatprep.subr.mxu1 %v3600_v11 }
  0x85   :  { %2627 = vmatpush3.msra.mxu1 %v3608_v12 }
  0x86   :  { %2628 = vmatprep.subr.mxu1 %v3614_v13 }
  0x87   :  { %2629 = vmatpush3.msra.mxu1 %v3620_v14 }
  0x88   :  { %2630 = vmatprep.subr.mxu1 %v3626_v15 }
  0x89   :  { %2631 = vmatpush3.msra.mxu1 %v3632_v16 }
  0x8a   :  { %2632 = vmatprep.subr.mxu1 %v3638_v17 }
  0x8b   :  { %2633 = vmatpush3.msra.mxu1 %v3644_v18 }
  0x8c   :  { %2634 = vmatprep.subr.mxu1 %v3650_v19 }
  0x8d   :  { %2635 = vmatpush3.msra.mxu1 %v3656_v20 }
  0x8e   :  { %2636 = vmatprep.subr.mxu1 %v3662_v21 }
  0x8f   :  { %2637 = vmatpush3.msra.mxu1 %v3668_v22 }
  0x90   :  { %2638 = vmatprep.subr.mxu1 %v3674_v23 }
  0x91   :  { %2639 = vmatpush3.msra.mxu1 %v3680_v24 }
  0x92   :  { %2640 = vmatprep.subr.mxu1 %v3686_v25 }
  0x93   :  { %2641 = vmatpush3.msra.mxu1 %v3692_v26 }
  0x94   :  { %2642 = vmatprep.subr.mxu1 %v3698_v27 }
  0x95   :  { %2643 = vmatpush3.msra.mxu1 %v3704_v28 }
  0x96   :  { %2644 = vmatprep.subr.mxu1 %v3709_v29 }
  0x97   :  { %2645 = vmatpush3.msra.mxu1 %v3714_v30 }
  0x98   :  { %2646 = vmatprep.subr.mxu1 %v3720_v31 }
  0x99   :  { %2647 = vmatpush3.msra.mxu1 %v3726_v32 }
  0x9a   :  { %2648 = vmatprep.subr.mxu1 %v3732_v33 }
  0x9b   :  { %2649 = vmatpush3.msra.mxu1 %v3738_v35 }
  0x9c   :  { %2653 = vmatprep.subr.mxu1 %v3554_v3 }
 0x102   :  { %v742_v37 = vpop.f32.mrf.mxu0 }
 0x103   :  { %v743_v49 = vadd.f32 %v742_v37, %v221_v45 }
 0x104   :  { %v744_v38 = vpop.f32.mrf.mxu0  ;;  %v785_v39 = vpop.f32.mrf.mxu1 }
 0x105   :  { %v745_v50 = vadd.f32 %v744_v38, %v225_v46  ;;  %v786_v56 = vadd.f32 %v785_v39, %v743_v49 }
 0x106   :  { %v746_v43 = vpop.f32.mrf.mxu0  ;;  %v787_v44 = vpop.f32.mrf.mxu1 }
 0x107   :  { %v747_v51 = vadd.f32 %v746_v43, %v221_v45  ;;  %v788_v57 = vadd.f32 %v787_v44, %v745_v50 }
 0x108   :  { %v748_v47 = vpop.f32.mrf.mxu0  ;;  %v789_v48 = vpop.f32.mrf.mxu1 }
 0x109   :  { %v749_v53 = vadd.f32 %v748_v47, %v225_v46  ;;  %v790_v59 = vadd.f32 %v789_v48, %v747_v51 }
 0x10a   :  { %v791_v54 = vpop.f32.mrf.mxu1 }
 0x10b   :  { %v792_v61 = vadd.f32 %v791_v54, %v749_v53 }
 0x142   :  { %v828_v52 = vpop.f32.mrf.mxu0 }
 0x143   :  { %v3752_v62 = vadd.f32 %v828_v52, %v786_v56 }
 0x144   :  { %v830_v55 = vpop.f32.mrf.mxu0 }
 0x145   :  { %v3754_v63 = vadd.f32 %v830_v55, %v788_v57 }
 0x146   :  { %v832_v60 = vpop.f32.mrf.mxu0 }
 0x147   :  { %v3756_v0 = vadd.f32 %v832_v60, %v790_v59  ;;  %v954_v37 = vmul.f32 %v3754_v63, %v3754_v63 }
 0x148   :  { %v834_v1 = vpop.f32.mrf.mxu0 }
 0x149   :  { %v837_v2 = vadd.f32 %v3756_v0, %v3752_v62  ;;  %v3760_v3 = vadd.f32 %v834_v1, %v792_v61  ;;  %v955_v61 = vmul.f32 %v3756_v0, %v3756_v0  ;;  %v953_v1 = vmul.f32 %v3752_v62, %v3752_v62 }
 0x14b   :  { %v838_v38 = vrot.slane %v837_v2, 4  ;;  %v844_v39 = vadd.f32 %v3760_v3, %v3754_v63  ;;  %v956_v41 = vmul.f32 %v3760_v3, %v3760_v3 }
 0x14d   :  { %v839_v42 = vadd.f32 %v838_v38, %v837_v2  ;;  %v845_v43 = vrot.slane %v844_v39, 4  ;;  %v964_v44 = vadd.f32 %v956_v41, %v954_v37  ;;  %v957_v2 = vadd.f32 %v955_v61, %v953_v1  ;;  %v3004_v38 = vld [vmem:[%s4214_s7 + $0xb8] sm:$0xff]   ;;  %v3007_v41 = vld [vmem:[%s4214_s7 + $0xf0] sm:$0xff]   ;;  %v3032_v61 = vld [vmem:[%s4214_s7 + $0x80] sm:$0xff]  }
 0x14e   :  { %v3033_v1 = vld [vmem:[%s4214_s7 + $0x40] sm:$0xff]  }
 0x14f   :  { %v840_v45 = vrot.slane %v839_v42, 2  ;;  %v846_v46 = vadd.f32 %v845_v43, %v844_v39  ;;  %v965_v47 = vrot.slane %v964_v44, 4  ;;  %v3011_v43 = vld [vmem:[%s4214_s7 + $0xe8] sm:$0xff]  }
 0x151   :  { %v841_v48 = vadd.f32 %v840_v45, %v839_v42  ;;  %v847_v49 = vrot.slane %v846_v46, 2  ;;  %v966_v50 = vadd.f32 %v965_v47, %v964_v44  ;;  %v3008_v42 = vld [vmem:[%s4214_s7 + $0xb0] sm:$0xff]   ;;  %v3012_v44 = vld [vmem:[%s4214_s7 + $0xa8] sm:$0xff]   ;;  %v3015_v45 = vld [vmem:[%s4214_s7 + $0xe0] sm:$0xff]  }
 0x152   :  { %v3019_v47 = vld [vmem:[%s4214_s7 + $0xd8] sm:$0xff]  }
 0x153   :  { %v848_v51 = vadd.f32 %v847_v49, %v846_v46  ;;  %v967_v52 = vrot.slane %v966_v50, 2  ;;  %v842_v53 = vrot.slane %v841_v48, 1  ;;  %v3016_v46 = vld [vmem:[%s4214_s7 + $0xa0] sm:$0xff]   ;;  %v3021_v49 = vld [vmem:[%s4214_s7 + $0x58] sm:$0xff]  }
 0x155   :  { %v849_v54 = vrot.slane %v848_v51, 1  ;;  %v968_v55 = vadd.f32 %v967_v52, %v966_v50  ;;  %v843_v59 = vadd.f32 %v842_v53, %v841_v48  ;;  %v3020_v48 = vld [vmem:[%s4214_s7 + $0x98] sm:$0xff]   ;;  %v3024_v52 = vld [vmem:[%s4214_s7 + $0x90] sm:$0xff]  }
 0x156   :  { %v3022_v50 = vld [vmem:[%s4214_s7 + $0x18] sm:$0xff]   ;;  %v3025_v53 = vld [vmem:[%s4214_s7 + $0x50] sm:$0xff]  }
 0x157   :  { %v850_v56 = vadd.f32 %v849_v54, %v848_v51  ;;  %v969_v57 = vrot.slane %v968_v55, 1  ;;  %v3023_v51 = vld [vmem:[%s4214_s7 + $0xd0] sm:$0xff]  }
 0x158   :  { %v3026_v54 = vld [vmem:[%s4214_s7 + $0x10] sm:$0xff]  }
 0x159   :  { %947 = vmatprep.mubr.f32.mxu1 %v850_v56  ;;  %v970_v60 = vadd.f32 %v969_v57, %v968_v55  ;;  %v3027_v55 = vld [vmem:[%s4214_s7 + $0xc8] sm:$0xff]  }
 0x15a   :  { %948 = vmatmul.mubr.f32.vlgmr.msra.gmra.mxu1 %v843_v59  ;;  %v3028_v56 = vld [vmem:[%s4214_s7 + $0x88] sm:$0xff]  }
 0x15b   :  { %2654 = vmatpush3.msra.mxu1 %v3559_v4  ;;  %1035 = vmatprep.mubr.f32.mxu1 %v970_v60  ;;  %v958_v4 = vrot.slane %v957_v2, 4  ;;  %v3029_v57 = vld [vmem:[%s4214_s7 + $0x48] sm:$0xff]   ;;  %v3031_v60 = vld [vmem:[%s4214_s7 + $0xc0] sm:$0xff]  }
 0x15c   :  { %2655 = vmatprep.subr.mxu1 %v3564_v5  ;;  %v3030_v59 = vld [vmem:[%s4214_s7 + $0x8] sm:$0xff]  }
 0x15d   :  { %2656 = vmatpush3.msra.mxu1 %v3570_v6  ;;  %v959_v5 = vadd.f32 %v958_v4, %v957_v2  ;;  %v3034_v2 = vld [vmem:[%s4214_s7] sm:$0xff]   ;;  %v3035_v4 = vld [vmem:[%s4214_s7 + $0x178] sm:$0xff]  }
 0x15e   :  { %2657 = vmatprep.subr.mxu1 %v3576_v7 }
 0x15f   :  { %2658 = vmatpush3.msra.mxu1 %v3582_v8  ;;  %v960_v6 = vrot.slane %v959_v5, 2 }
 0x160   :  { %2659 = vmatprep.subr.mxu1 %v3588_v9 }
 0x161   :  { %2660 = vmatpush3.msra.mxu1 %v3594_v10  ;;  %v961_v7 = vadd.f32 %v960_v6, %v959_v5  ;;  %v1050_v10 = vld [vmem:[%s4213_s6] sm:$0xff] }
 0x162   :  { %2661 = vmatprep.subr.mxu1 %v3600_v11  ;;  %v3101_v11 = vmov 0.0  }
 0x163   :  { %2662 = vmatpush3.msra.mxu1 %v3608_v12  ;;  %v962_v8 = vrot.slane %v961_v7, 1  ;;  %1126 = vmatprep.mubr.f32.mxu0 %v3101_v11  ;;  %v1052_v12 = vcombine.high %v1050_v10, %v1050_v10 }
 0x164   :  { %2663 = vmatprep.subr.mxu1 %v3614_v13  ;;  %v3005_v13 = vld [vmem:[%s4214_s7 + $0x78] sm:$0xff]  }
 0x165   :  { %2664 = vmatpush3.msra.mxu1 %v3620_v14  ;;  %v963_v9 = vadd.f32 %v962_v8, %v961_v7  ;;  %2489 = vmatprep.subr.msk.mxu0 %vm1057_vm8, %v1052_v12  ;;  %v3006_v14 = vld [vmem:[%s4214_s7 + $0x38] sm:$0xff]  }
 0x166   :  { %2665 = vmatprep.subr.mxu1 %v3626_v15  ;;  %2490 = vmatpush1.msk.msra.mxu0 %vm1057_vm8, %v1050_v10  ;;  %v3009_v15 = vld [vmem:[%s4214_s7 + $0x70] sm:$0xff]  }
 0x167   :  { %2666 = vmatpush3.msra.mxu1 %v3632_v16  ;;  %2492 = vmatprep.subr.msk.mxu0 %vm1057_vm8, %v1052_v12  ;;  %v3010_v16 = vld [vmem:[%s4214_s7 + $0x30] sm:$0xff]  }
 0x168   :  { %2667 = vmatprep.subr.mxu1 %v3638_v17  ;;  %v3013_v17 = vld [vmem:[%s4214_s7 + $0x68] sm:$0xff]  }
 0x169   :  { %2668 = vmatpush3.msra.mxu1 %v3644_v18  ;;  %v3014_v18 = vld [vmem:[%s4214_s7 + $0x28] sm:$0xff]  }
 0x16a   :  { %2669 = vmatprep.subr.mxu1 %v3650_v19  ;;  %v3017_v19 = vld [vmem:[%s4214_s7 + $0x60] sm:$0xff]  }
 0x16b   :  { %2670 = vmatpush3.msra.mxu1 %v3656_v20  ;;  %v3018_v20 = vld [vmem:[%s4214_s7 + $0x20] sm:$0xff]  }
 0x16c   :  { %2671 = vmatprep.subr.mxu1 %v3662_v21 }
 0x16d   :  { %2672 = vmatpush3.msra.mxu1 %v3668_v22 }
 0x16e   :  { %2673 = vmatprep.subr.mxu1 %v3674_v23 }
 0x16f   :  { %2674 = vmatpush3.msra.mxu1 %v3680_v24 }
 0x170   :  { %2675 = vmatprep.subr.mxu1 %v3686_v25 }
 0x171   :  { %2676 = vmatpush3.msra.mxu1 %v3692_v26 }
 0x172   :  { %2677 = vmatprep.subr.mxu1 %v3698_v27 }
 0x173   :  { %2678 = vmatpush3.msra.mxu1 %v3704_v28 }
 0x174   :  { %2679 = vmatprep.subr.mxu1 %v3709_v29 }
 0x175   :  { %2680 = vmatpush3.msra.mxu1 %v3714_v30  ;;  %v1043_v30 = vld [vmem:[%s4215_s3] sm:$0x1] }
 0x176   :  { %2681 = vmatprep.subr.mxu1 %v3720_v31 }
 0x177   :  { %2682 = vmatpush3.msra.mxu1 %v3726_v32 }
 0x178   :  { %2683 = vmatprep.subr.mxu1 %v3732_v33  ;;  %v3003_v33 = vld [vmem:[%s4214_s7 + $0xf8] sm:$0xff]  }
 0x179   :  { %2684 = vmatpush3.msra.mxu1 %v3738_v35  ;;  %v1047_v35 = vld [vmem:[%s4216_s4] sm:$0x1] }
 0x17a   :  { %1036 = vmatmul.mubr.f32.vlgmr.msra.gmra.mxu1 %v963_v9  ;;  %2688 = vmatprep.subr.bf16.mxu1 %v3005_v13 }
 0x17b   :  { %2689 = vmatpush3.bf16.msra.mxu1 %v3006_v14 }
 0x17c   :  { %2690 = vmatprep.subr.bf16.mxu1 %v3009_v15 }
 0x17f   :  { %2691 = vmatpush3.bf16.msra.mxu1 %v3010_v16 }
 0x180   :  { %2692 = vmatprep.subr.bf16.mxu1 %v3013_v17 }
 0x183   :  { %2693 = vmatpush3.bf16.msra.mxu1 %v3014_v18 }
 0x184   :  { %2694 = vmatprep.subr.bf16.mxu1 %v3017_v19 }
 0x187   :  { %2695 = vmatpush3.bf16.msra.mxu1 %v3018_v20 }
 0x188   :  { %2696 = vmatprep.subr.bf16.mxu1 %v3021_v49  ;;  %v3044_v49 = vld [vmem:[%s4214_s7 + $0x118] sm:$0xff]  }
 0x18b   :  { %2697 = vmatpush3.bf16.msra.mxu1 %v3022_v50  ;;  %v3045_v50 = vld [vmem:[%s4214_s7 + $0x150] sm:$0xff]  }
 0x18c   :  { %2698 = vmatprep.subr.bf16.mxu1 %v3025_v53  ;;  %v3048_v53 = vld [vmem:[%s4214_s7 + $0x108] sm:$0xff]  }
 0x18f   :  { %2699 = vmatpush3.bf16.msra.mxu1 %v3026_v54  ;;  %v3049_v54 = vld [vmem:[%s4214_s7 + $0x140] sm:$0xff]  }
 0x190   :  { %2700 = vmatprep.subr.bf16.mxu1 %v3029_v57  ;;  %v3050_v57 = vld [vmem:[%s4214_s7 + $0x100] sm:$0xff]  }
 0x193   :  { %2701 = vmatpush3.bf16.msra.mxu1 %v3030_v59 }
 0x194   :  { %2702 = vmatprep.subr.bf16.mxu1 %v3033_v1  ;;  %v3051_v1 = vld [vmem:[%s4217_s9 + $0x78] sm:$0xff]  }
 0x197   :  { %2703 = vmatpush3.bf16.msra.mxu1 %v3034_v2  ;;  %v3052_v2 = vld [vmem:[%s4217_s9 + $0x38] sm:$0xff]  }
 0x198   :  { %2732 = vmatprep.subr.bf16.mxu1 %v3035_v4  ;;  %v3053_v4 = vld [vmem:[%s4217_s9 + $0xb8] sm:$0xff]  }
 0x21a   :  { %v2650_v21 = vpop.f32.mrf.mxu1 }
 0x21c   :  { %v2651_v22 = vpop.f32.mrf.mxu1 }
 0x21d   :  { %v2652_v23 = vadd.f32 %v2651_v22, %v2650_v21 }
 0x21f   :  { %v1041_v26 = vmul.f32 %v2652_v23, %v2652_v23 }
 0x23a   :  { %v2685_v24 = vpop.f32.mrf.mxu1 }
 0x23c   :  { %v2686_v25 = vpop.f32.mrf.mxu1 }
 0x23d   :  { %v2687_v27 = vadd.f32 %v2686_v25, %v2685_v24 }
 0x23f   :  { %v1042_v28 = vsub.f32 %v2687_v27, %v1041_v26 }
 0x241   :  { %v1044_v29 = vadd.f32 1e-05, %v1042_v28 }
 0x243   :  { %3099 = vrsqrt.f32 %v1044_v29 }
 0x250   :  { %v3100_v31 = vpop.eup %3099 }
 0x251   :  { %v1046_v32 = vmul.f32 %v3100_v31, %v1043_v30 }
 0x253   :  { %2491 = vmatmul.mubr.msk.f32.vlgmr.msra.gmra.mxu0 %vm1053_vm9, %v1046_v32  ;;  %v1048_v37 = vmul.f32 %v2652_v23, %v1046_v32 }
 0x254   :  { %2493 = vmatpush1.msk.msra.mxu0 %vm1057_vm8, %v1050_v10  ;;  %1200 = vmatprep.mubr.f32.mxu0 %v3101_v11 }
 0x255   :  { %v1049_v39 = vsub.f32 %v1047_v35, %v1048_v37  ;;  %2710 = vmatprep.subr.bf16.mxu0 %v3003_v33 }
 0x257   :  { %2494 = vmatmul.mubr.msk.f32.vlgmr.msra.gmra.mxu0 %vm1053_vm9, %v1049_v39 }
 0x258   :  { %2711 = vmatpush3.bf16.msra.mxu0 %v3004_v38  ;;  %v3036_v38 = vld [vmem:[%s4214_s7 + $0x138] sm:$0xff]  }
 0x259   :  { %2712 = vmatprep.subr.bf16.mxu0 %v3007_v41  ;;  %v3037_v41 = vld [vmem:[%s4214_s7 + $0x170] sm:$0xff]  }
 0x25c   :  { %2713 = vmatpush3.bf16.msra.mxu0 %v3008_v42 }
 0x25d   :  { %2714 = vmatprep.subr.bf16.mxu0 %v3011_v43  ;;  %v3038_v43 = vld [vmem:[%s4214_s7 + $0x130] sm:$0xff]  }
 0x260   :  { %2715 = vmatpush3.bf16.msra.mxu0 %v3012_v44  ;;  %v3039_v44 = vld [vmem:[%s4214_s7 + $0x168] sm:$0xff]  }
 0x261   :  { %2716 = vmatprep.subr.bf16.mxu0 %v3015_v45  ;;  %v3040_v45 = vld [vmem:[%s4214_s7 + $0x128] sm:$0xff]  }
 0x264   :  { %2717 = vmatpush3.bf16.msra.mxu0 %v3016_v46  ;;  %v3041_v46 = vld [vmem:[%s4214_s7 + $0x160] sm:$0xff]  }
 0x265   :  { %2718 = vmatprep.subr.bf16.mxu0 %v3019_v47  ;;  %v3042_v47 = vld [vmem:[%s4214_s7 + $0x120] sm:$0xff]  }
 0x268   :  { %2719 = vmatpush3.bf16.msra.mxu0 %v3020_v48  ;;  %v3043_v48 = vld [vmem:[%s4214_s7 + $0x158] sm:$0xff]  }
 0x269   :  { %2720 = vmatprep.subr.bf16.mxu0 %v3023_v51  ;;  %v3046_v51 = vld [vmem:[%s4214_s7 + $0x110] sm:$0xff]  }
 0x26c   :  { %2721 = vmatpush3.bf16.msra.mxu0 %v3024_v52  ;;  %v3047_v52 = vld [vmem:[%s4214_s7 + $0x148] sm:$0xff]  }
 0x26d   :  { %2722 = vmatprep.subr.bf16.mxu0 %v3027_v55 }
 0x270   :  { %2723 = vmatpush3.bf16.msra.mxu0 %v3028_v56 }
 0x271   :  { %2724 = vmatprep.subr.bf16.mxu0 %v3031_v60 }
 0x274   :  { %2725 = vmatpush3.bf16.msra.mxu0 %v3032_v61 }
 0x275   :  { %2754 = vmatprep.subr.bf16.mxu0 %v3051_v1  ;;  %v3077_v1 = vld [vmem:[%s4218_s11 + $0xb8] sm:$0xff]  }
 0x313   :  { %v1128_v5 = vpop.f32.mrf.mxu0 }
 0x314   :  { %v1210_v6 = vrot.slane %v1128_v5, %v3745_v40  ;;  %v3054_v5 = vld [vmem:[%s4217_s9 + $0x70] sm:$0xff]  }
 0x315   :  { %v1130_v7 = vpop.f32.mrf.mxu0 }
 0x316   :  { %v1214_v8 = vrot.slane %v1130_v7, %v3745_v40  ;;  %v1215_v10 = vmul.f32 %v1210_v6, %v3752_v62  ;;  %v1217_v12 = vmul.f32 %v1210_v6, %v3756_v0  ;;  %v3055_v6 = vld [vmem:[%s4217_s9 + $0x30] sm:$0xff]  }
 0x317   :  { %v1202_v9 = vpop.f32.mrf.mxu0  ;;  %v3056_v7 = vld [vmem:[%s4217_s9 + $0xb0] sm:$0xff]  }
 0x318   :  { %v1222_v13 = vrot.slane %v1202_v9, %v3745_v40  ;;  %v1216_v14 = vmul.f32 %v1214_v8, %v3754_v63  ;;  %v1218_v16 = vmul.f32 %v1214_v8, %v3760_v3  ;;  %v3057_v8 = vld [vmem:[%s4217_s9 + $0x68] sm:$0xff]  }
 0x319   :  { %v1204_v15 = vpop.f32.mrf.mxu0  ;;  %v3058_v9 = vld [vmem:[%s4217_s9 + $0x28] sm:$0xff]  }
 0x31a   :  { %v1227_v17 = vadd.f32 %v1222_v13, %v1215_v10  ;;  %v1229_v18 = vadd.f32 %v1222_v13, %v1217_v12  ;;  %v1226_v19 = vrot.slane %v1204_v15, %v3745_v40  ;;  %v3059_v10 = vld [vmem:[%s4217_s9 + $0xa8] sm:$0xff]   ;;  %v3060_v12 = vld [vmem:[%s4217_s9 + $0x60] sm:$0xff]   ;;  %v3063_v15 = vld [vmem:[%s4217_s9 + $0x58] sm:$0xff]  }
 0x31b   :  { %v3061_v13 = vld [vmem:[%s4217_s9 + $0x20] sm:$0xff]  }
 0x31c   :  { %v1231_v20 = vmax.f32 %v1227_v17, 0.0  ;;  %v1233_v21 = vmax.f32 %v1229_v18, 0.0  ;;  %v1228_v22 = vadd.f32 %v1226_v19, %v1216_v14  ;;  %v1230_v23 = vadd.f32 %v1226_v19, %v1218_v16  ;;  %v3062_v14 = vld [vmem:[%s4217_s9 + $0xa0] sm:$0xff]   ;;  %v3064_v16 = vld [vmem:[%s4217_s9 + $0x18] sm:$0xff]   ;;  %v3066_v18 = vld [vmem:[%s4217_s9 + $0x50] sm:$0xff]  }
 0x31d   :  { %v3065_v17 = vld [vmem:[%s4217_s9 + $0x98] sm:$0xff]   ;;  %v3067_v19 = vld [vmem:[%s4217_s9 + $0x10] sm:$0xff]  }
 0x31e   :  { %v1235_v24 = vrot.slane %v1231_v20, 7  ;;  %v1237_v25 = vrot.slane %v1233_v21, 7  ;;  %v1232_v62 = vmax.f32 %v1228_v22, 0.0  ;;  %v1234_v26 = vmax.f32 %v1230_v23, 0.0  ;;  %v3070_v22 = vld [vmem:[%s4217_s9 + $0x8] sm:$0xff]  }
 0x31f   :  { %v1261_v40 = vpack.c.bf16 %v1233_v21, %v1231_v20  ;;  %v1247_v55 = vrot.slane %v1231_v20, 1  ;;  %v1249_v56 = vrot.slane %v1233_v21, 1  ;;  %v3068_v20 = vld [vmem:[%s4217_s9 + $0x90] sm:$0xff]   ;;  %v3069_v21 = vld [vmem:[%s4217_s9 + $0x48] sm:$0xff]  }
 0x320   :  { %v1236_v0 = vrot.slane %v1232_v62, 7  ;;  %v1238_v27 = vrot.slane %v1234_v26, 7  ;;  %v1248_v28 = vrot.slane %v1232_v62, 1  ;;  %v1250_v29 = vrot.slane %v1234_v26, 1  ;;  %v3071_v23 = vld [vmem:[%s4217_s9 + $0x88] sm:$0xff]  }
 0x321   :  { %v1239_v63 = vsel %vm84_vm2, %v1235_v24, %v1237_v25  ;;  %v1241_v3 = vsel %vm84_vm2, %v1237_v25, %v1235_v24  ;;  %v1262_v30 = vpack.c.bf16 %v1234_v26, %v1232_v62  ;;  %v1251_v59 = vsel %vm101_vm4, %v1247_v55, %v1249_v56  ;;  %v3072_v24 = vld [vmem:[%s4217_s9 + $0x40] sm:$0xff]   ;;  %v3075_v26 = vld [vmem:[%s4218_s11 + $0x78] sm:$0xff]  }
 0x322   :  { %v1240_v31 = vsel %vm84_vm2, %v1236_v0, %v1238_v27  ;;  %v1242_v32 = vsel %vm84_vm2, %v1238_v27, %v1236_v0  ;;  %v1252_v33 = vsel %vm101_vm4, %v1248_v28, %v1250_v29  ;;  %v1254_v35 = vsel %vm101_vm4, %v1250_v29, %v1248_v28  ;;  %v3073_v25 = vld [vmem:[%s4217_s9] sm:$0xff]  }
 0x323   :  { %1729 = vmatprep.mubr.bf16.mxu0 %v1262_v30  ;;  %v2545_v37 = vpack.c.bf16 %v1240_v31, %v1242_v32  ;;  %v2548_v39 = vpack.c.bf16 %v1239_v63, %v1241_v3  ;;  %v2551_v42 = vpack.c.bf16 %v1254_v35, %v1252_v33  ;;  %v1253_v60 = vsel %vm101_vm4, %v1249_v56, %v1247_v55  ;;  %v3074_v62 = vld [vmem:[%s4217_s9 + $0x80] sm:$0xff]  }
 0x324   :  { %1730 = vmatmul.mubr.bf16.vlgmr.msra.gmra.mxu0 %v1261_v40  ;;  %v2554_v61 = vpack.c.bf16 %v1253_v60, %v1251_v59  ;;  %v2495_v40 = vld [vmem:[%s4219_s8] ss:$0 sm:$0xff] }
 0x325   :  { %2546 = vmatprep.mubr.msk.bf16.mxu1 %vm3344_vm3, %v2545_v37  ;;  %2755 = vmatpush3.bf16.msra.mxu0 %v3052_v2 }
 0x326   :  { %2549 = vmatmul.mubr.msk.bf16.vlgmr.msra.gmra.mxu1 %vm3344_vm3, %v2548_v39  ;;  %2756 = vmatprep.subr.bf16.mxu0 %v3054_v5  ;;  %v3078_v5 = vld [vmem:[%s4218_s11 + $0x70] sm:$0xff]  }
 0x327   :  { %2733 = vmatpush3.bf16.msra.mxu1 %v3036_v38  ;;  %2552 = vmatprep.mubr.msk.bf16.mxu1 %vm3453_vm7, %v2551_v42 }
 0x328   :  { %2734 = vmatprep.subr.bf16.mxu1 %v3037_v41 }
 0x329   :  { %2757 = vmatpush3.bf16.msra.mxu0 %v3055_v6  ;;  %v3079_v6 = vld [vmem:[%s4218_s11 + $0x30] sm:$0xff]  }
 0x32a   :  { %2758 = vmatprep.subr.bf16.mxu0 %v3057_v8  ;;  %v3081_v8 = vld [vmem:[%s4218_s11 + $0x68] sm:$0xff]  }
 0x32b   :  { %2735 = vmatpush3.bf16.msra.mxu1 %v3038_v43 }
 0x32c   :  { %2736 = vmatprep.subr.bf16.mxu1 %v3039_v44 }
 0x32d   :  { %2759 = vmatpush3.bf16.msra.mxu0 %v3058_v9  ;;  %v3082_v9 = vld [vmem:[%s4218_s11 + $0x28] sm:$0xff]  }
 0x32e   :  { %2760 = vmatprep.subr.bf16.mxu0 %v3060_v12  ;;  %v3084_v12 = vld [vmem:[%s4218_s11 + $0x60] sm:$0xff]  }
 0x32f   :  { %2737 = vmatpush3.bf16.msra.mxu1 %v3040_v45 }
 0x330   :  { %2738 = vmatprep.subr.bf16.mxu1 %v3041_v46 }
 0x331   :  { %2761 = vmatpush3.bf16.msra.mxu0 %v3061_v13  ;;  %v3085_v13 = vld [vmem:[%s4218_s11 + $0x20] sm:$0xff]  }
 0x332   :  { %2762 = vmatprep.subr.bf16.mxu0 %v3063_v15  ;;  %v3087_v15 = vld [vmem:[%s4218_s11 + $0x58] sm:$0xff]  }
 0x333   :  { %2739 = vmatpush3.bf16.msra.mxu1 %v3042_v47 }
 0x334   :  { %2740 = vmatprep.subr.bf16.mxu1 %v3043_v48 }
 0x335   :  { %2763 = vmatpush3.bf16.msra.mxu0 %v3064_v16  ;;  %v3088_v16 = vld [vmem:[%s4218_s11 + $0x18] sm:$0xff]  }
 0x336   :  { %2764 = vmatprep.subr.bf16.mxu0 %v3066_v18  ;;  %v3090_v18 = vld [vmem:[%s4218_s11 + $0x50] sm:$0xff]  }
 0x337   :  { %2741 = vmatpush3.bf16.msra.mxu1 %v3044_v49 }
 0x338   :  { %2742 = vmatprep.subr.bf16.mxu1 %v3045_v50 }
 0x339   :  { %2765 = vmatpush3.bf16.msra.mxu0 %v3067_v19  ;;  %v3091_v19 = vld [vmem:[%s4218_s11 + $0x10] sm:$0xff]  }
 0x33a   :  { %2766 = vmatprep.subr.bf16.mxu0 %v3069_v21  ;;  %v3093_v21 = vld [vmem:[%s4218_s11 + $0x48] sm:$0xff]  }
 0x33b   :  { %2743 = vmatpush3.bf16.msra.mxu1 %v3046_v51 }
 0x33c   :  { %2744 = vmatprep.subr.bf16.mxu1 %v3047_v52 }
 0x33d   :  { %2767 = vmatpush3.bf16.msra.mxu0 %v3070_v22  ;;  %v3094_v22 = vld [vmem:[%s4218_s11 + $0x8] sm:$0xff]  }
 0x33e   :  { %2768 = vmatprep.subr.bf16.mxu0 %v3072_v24  ;;  %v3096_v24 = vld [vmem:[%s4218_s11 + $0x40] sm:$0xff]  }
 0x33f   :  { %2745 = vmatpush3.bf16.msra.mxu1 %v3048_v53 }
 0x340   :  { %2746 = vmatprep.subr.bf16.mxu1 %v3049_v54 }
 0x341   :  { %2769 = vmatpush3.bf16.msra.mxu0 %v3073_v25  ;;  %v3097_v25 = vld [vmem:[%s4218_s11] sm:$0xff]  }
 0x342   :  { %2785 = vmatprep.subr.bf16.mxu0 %v3075_v26 }
 0x343   :  { %2747 = vmatpush3.bf16.msra.mxu1 %v3050_v57 }
 0x344   :  { %2816 = vmatprep.subr.bf16.mxu1 %v3101_v11 }
 0x346   :  { %2555 = vmatmul.mubr.msk.bf16.vlgmr.msra.gmra.mxu1 %vm3453_vm7, %v2554_v61  ;;  %v3076_v61 = vld [vmem:[%s4218_s11 + $0x38] sm:$0xff]  }
 0x347   :  { %2817 = vmatpush3.bf16.msra.mxu1 %v3053_v4  ;;  %2832 = vmatprep.mubr.msk.bf16.mxu1 %vm3102_vm10, %v3101_v11 }
 0x348   :  { %2818 = vmatprep.subr.bf16.mxu1 %v3101_v11 }
 0x34b   :  { %2819 = vmatpush3.bf16.msra.mxu1 %v3056_v7  ;;  %v3080_v7 = vld [vmem:[%s4218_s11 + $0xb0] sm:$0xff]  }
 0x34c   :  { %2820 = vmatprep.subr.bf16.mxu1 %v3101_v11 }
 0x34f   :  { %2821 = vmatpush3.bf16.msra.mxu1 %v3059_v10  ;;  %v3083_v10 = vld [vmem:[%s4218_s11 + $0xa8] sm:$0xff]  }
 0x350   :  { %2822 = vmatprep.subr.bf16.mxu1 %v3101_v11 }
 0x353   :  { %2823 = vmatpush3.bf16.msra.mxu1 %v3062_v14  ;;  %v3086_v14 = vld [vmem:[%s4218_s11 + $0xa0] sm:$0xff]  }
 0x354   :  { %2824 = vmatprep.subr.bf16.mxu1 %v3101_v11 }
 0x357   :  { %2825 = vmatpush3.bf16.msra.mxu1 %v3065_v17  ;;  %v3089_v17 = vld [vmem:[%s4218_s11 + $0x98] sm:$0xff]  }
 0x358   :  { %2826 = vmatprep.subr.bf16.mxu1 %v3101_v11 }
 0x35b   :  { %2827 = vmatpush3.bf16.msra.mxu1 %v3068_v20  ;;  %v3092_v20 = vld [vmem:[%s4218_s11 + $0x90] sm:$0xff]  }
 0x35c   :  { %2828 = vmatprep.subr.bf16.mxu1 %v3101_v11 }
 0x35f   :  { %2829 = vmatpush3.bf16.msra.mxu1 %v3071_v23  ;;  %v3095_v23 = vld [vmem:[%s4218_s11 + $0x88] sm:$0xff]  }
 0x360   :  { %2830 = vmatprep.subr.bf16.mxu1 %v3101_v11 }
 0x363   :  { %2831 = vmatpush3.bf16.msra.mxu1 %v3074_v62  ;;  %v3098_v62 = vld [vmem:[%s4218_s11 + $0x80] sm:$0xff]  }
 0x364   :  { %2836 = vmatprep.subr.bf16.mxu1 %v3101_v11 }
 0x3e4   :  { %v2726_v28 = vpop.f32.mrf.mxu0 }
 0x3e6   :  { %v2704_v0 = vpop.f32.mrf.mxu1  ;;  %v2727_v63 = vpop.f32.mrf.mxu0 }
 0x3e7   :  { %v2728_v37 = vadd.f32 %v2727_v63, %v2726_v28 }
 0x3e8   :  { %v2705_v27 = vpop.f32.mrf.mxu1  ;;  %v2729_v31 = vpop.f32.mrf.mxu0 }
 0x3e9   :  { %v2706_v3 = vadd.f32 %v2705_v27, %v2704_v0  ;;  %v2556_v27 = vld [vmem:[%s4220_s10] ss:$0 sm:$0xff] }
 0x3ea   :  { %v2707_v29 = vpop.f32.mrf.mxu1  ;;  %v2730_v38 = vpop.f32.mrf.mxu0 }
 0x3eb   :  { %v1691_v33 = vadd.f32 %v2706_v3, %v2495_v40  ;;  %v2731_v45 = vadd.f32 %v2730_v38, %v2729_v31 }
 0x3ec   :  { %v2708_v30 = vpop.f32.mrf.mxu1 }
 0x3ed   :  { %v2709_v32 = vadd.f32 %v2708_v30, %v2707_v29  ;;  %v1732_v43 = vadd.f32 %v2728_v37, %v1691_v33 }
 0x3ef   :  { %v1694_v41 = vadd.f32 %v2709_v32, %v2495_v40 }
 0x3f1   :  { %v1735_v48 = vadd.f32 %v2731_v45, %v1694_v41 }
 0x406   :  { %v2748_v35 = vpop.f32.mrf.mxu1 }
 0x408   :  { %v2749_v39 = vpop.f32.mrf.mxu1 }
 0x409   :  { %v2750_v42 = vadd.f32 %v2749_v39, %v2748_v35 }
 0x40a   :  { %v2751_v44 = vpop.f32.mrf.mxu1 }
 0x40b   :  { %v4083_v46 = vadd.f32 %v2750_v42, %v1732_v43 }
 0x40c   :  { %v2752_v47 = vpop.f32.mrf.mxu1 }
 0x40d   :  { %v2753_v49 = vadd.f32 %v2752_v47, %v2751_v44  ;;  %v1779_v51 = vrot.slane %v4083_v46, 7  ;;  %v1785_v52 = vrot.slane %v4083_v46, 1 }
 0x40f   :  { %v4085_v50 = vadd.f32 %v2753_v49, %v1735_v48 }
 0x411   :  { %v1780_v53 = vrot.slane %v4085_v50, 7  ;;  %v1786_v54 = vrot.slane %v4085_v50, 1  ;;  %v1792_v55 = vpack.c.bf16 %v4085_v50, %v4083_v46 }
 0x413   :  { %2025 = vmatprep.mubr.bf16.mxu0 %v1792_v55  ;;  %v1781_v56 = vsel %vm84_vm2, %v1779_v51, %v1780_v53  ;;  %v1782_v57 = vsel %vm84_vm2, %v1780_v53, %v1779_v51  ;;  %v1787_v59 = vsel %vm101_vm4, %v1785_v52, %v1786_v54  ;;  %v1788_v60 = vsel %vm101_vm4, %v1786_v54, %v1785_v52 }
 0x414   :  { %v2582_v2 = vpack.c.bf16 %v1781_v56, %v1782_v57  ;;  %v2585_v4 = vpack.c.bf16 %v1788_v60, %v1787_v59  ;;  %v2587_v56 = vld [vmem:[%s4221_s12] ss:$0 sm:$0xff] }
 0x416   :  { %2583 = vmatmul.mubr.msk.bf16.vlgmr.msra.gmra.mxu0 %vm3344_vm3, %v2582_v2  ;;  %2833 = vmatmul.mubr.msk.bf16.vlgmr.msra.gmra.mxu1 %vm3453_vm7, %v2585_v4 }
 0x417   :  { %2786 = vmatpush3.bf16.msra.mxu0 %v3076_v61  ;;  %2837 = vmatpush3.bf16.msra.mxu1 %v3077_v1 }
 0x418   :  { %2787 = vmatprep.subr.bf16.mxu0 %v3078_v5  ;;  %2838 = vmatprep.subr.bf16.mxu1 %v3101_v11 }
 0x419   :  { %2852 = vmatprep.mubr.msk.bf16.mxu1 %vm3102_vm10, %v3101_v11 }
 0x41b   :  { %2788 = vmatpush3.bf16.msra.mxu0 %v3079_v6  ;;  %2839 = vmatpush3.bf16.msra.mxu1 %v3080_v7 }
 0x41c   :  { %2789 = vmatprep.subr.bf16.mxu0 %v3081_v8  ;;  %2840 = vmatprep.subr.bf16.mxu1 %v3101_v11 }
 0x41f   :  { %2790 = vmatpush3.bf16.msra.mxu0 %v3082_v9  ;;  %2841 = vmatpush3.bf16.msra.mxu1 %v3083_v10 }
 0x420   :  { %2842 = vmatprep.subr.bf16.mxu1 %v3101_v11  ;;  %2791 = vmatprep.subr.bf16.mxu0 %v3084_v12 }
 0x423   :  { %2792 = vmatpush3.bf16.msra.mxu0 %v3085_v13  ;;  %2843 = vmatpush3.bf16.msra.mxu1 %v3086_v14 }
 0x424   :  { %2844 = vmatprep.subr.bf16.mxu1 %v3101_v11  ;;  %2793 = vmatprep.subr.bf16.mxu0 %v3087_v15 }
 0x427   :  { %2794 = vmatpush3.bf16.msra.mxu0 %v3088_v16  ;;  %2845 = vmatpush3.bf16.msra.mxu1 %v3089_v17 }
 0x428   :  { %2846 = vmatprep.subr.bf16.mxu1 %v3101_v11  ;;  %2795 = vmatprep.subr.bf16.mxu0 %v3090_v18 }
 0x42b   :  { %2796 = vmatpush3.bf16.msra.mxu0 %v3091_v19  ;;  %2847 = vmatpush3.bf16.msra.mxu1 %v3092_v20 }
 0x42c   :  { %2848 = vmatprep.subr.bf16.mxu1 %v3101_v11  ;;  %2797 = vmatprep.subr.bf16.mxu0 %v3093_v21 }
 0x42f   :  { %2798 = vmatpush3.bf16.msra.mxu0 %v3094_v22  ;;  %2849 = vmatpush3.bf16.msra.mxu1 %v3095_v23 }
 0x430   :  { %2850 = vmatprep.subr.bf16.mxu1 %v3101_v11  ;;  %2799 = vmatprep.subr.bf16.mxu0 %v3096_v24 }
 0x433   :  { %2800 = vmatpush3.bf16.msra.mxu0 %v3097_v25  ;;  %2851 = vmatpush3.bf16.msra.mxu1 %v3098_v62 }
 0x4d6   :  { %v2770_v26 = vpop.f32.mrf.mxu0  ;;  %v2068_v0 = vpop.f32.mrf.mxu1 }
 0x4d8   :  { %v2771_v28 = vpop.f32.mrf.mxu0  ;;  %v2834_v29 = vpop.f32.mrf.mxu1 }
 0x4d9   :  { %v2772_v11 = vadd.f32 %v2771_v28, %v2770_v26 }
 0x4da   :  { %v2773_v63 = vpop.f32.mrf.mxu0  ;;  %v2071_v3 = vpop.f32.mrf.mxu1 }
 0x4db   :  { %v2028_v30 = vadd.f32 %v2772_v11, %v2556_v27 }
 0x4dc   :  { %v2774_v40 = vpop.f32.mrf.mxu0  ;;  %v2835_v31 = vpop.f32.mrf.mxu1 }
 0x4dd   :  { %v2069_v32 = vadd.f32 %v2068_v0, %v2028_v30  ;;  %v2775_v33 = vadd.f32 %v2774_v40, %v2773_v63 }
 0x4df   :  { %v2031_v35 = vadd.f32 %v2775_v33, %v2556_v27  ;;  %v2075_v37 = vmax.f32 %v2069_v32, 0.0 }
 0x4e1   :  { %v2072_v38 = vadd.f32 %v2071_v3, %v2031_v35  ;;  %v2077_v41 = vrot.slane %v2075_v37, 7  ;;  %v2083_v42 = vrot.slane %v2075_v37, 1 }
 0x4e3   :  { %v2076_v39 = vmax.f32 %v2072_v38, 0.0 }
 0x4e5   :  { %v2078_v43 = vrot.slane %v2076_v39, 7  ;;  %v2084_v44 = vrot.slane %v2076_v39, 1  ;;  %v2090_v45 = vpack.c.bf16 %v2076_v39, %v2075_v37 }
 0x4e7   :  { %2323 = vmatprep.mubr.bf16.mxu0 %v2090_v45  ;;  %v2079_v47 = vsel %vm84_vm2, %v2077_v41, %v2078_v43  ;;  %v2080_v48 = vsel %vm84_vm2, %v2078_v43, %v2077_v41  ;;  %v2085_v49 = vsel %vm101_vm4, %v2083_v42, %v2084_v44  ;;  %v2086_v51 = vsel %vm101_vm4, %v2084_v44, %v2083_v42 }
 0x4e8   :  { %v2613_v52 = vpack.c.bf16 %v2079_v47, %v2080_v48  ;;  %v2616_v53 = vpack.c.bf16 %v2086_v51, %v2085_v49 }
 0x4ea   :  { %2614 = vmatmul.mubr.msk.bf16.vlgmr.msra.gmra.mxu0 %vm3344_vm3, %v2613_v52  ;;  %2853 = vmatmul.mubr.msk.bf16.vlgmr.msra.gmra.mxu1 %vm3453_vm7, %v2616_v53 }
 0x5aa   :  { %v2801_v54 = vpop.f32.mrf.mxu0  ;;  %v2366_v55 = vpop.f32.mrf.mxu1 }
 0x5ac   :  { %v2802_v57 = vpop.f32.mrf.mxu0  ;;  %v2854_v59 = vpop.f32.mrf.mxu1 }
 0x5ad   :  { %v2803_v60 = vadd.f32 %v2802_v57, %v2801_v54 }
 0x5ae   :  { %v2804_v61 = vpop.f32.mrf.mxu0  ;;  %v2369_v34 = vpop.f32.mrf.mxu1 }
 0x5af   :  { %v2326_v1 = vadd.f32 %v2803_v60, %v2587_v56 }
 0x5b0   :  { %v2805_v2 = vpop.f32.mrf.mxu0  ;;  %v2855_v4 = vpop.f32.mrf.mxu1 }
 0x5b1   :  { %v2367_v5 = vadd.f32 %v2366_v55, %v2326_v1  ;;  %v2806_v58 = vadd.f32 %v2805_v2, %v2804_v61 }
 0x5b3   :  { %v2373_v6 = vadd.f32 %v2367_v5, %v4083_v46  ;;  %v2329_v36 = vadd.f32 %v2806_v58, %v2587_v56 }
 0x5b5   :  { %2375 = vst [vmem:[%s4222_s13] sm:$0xff] %v2373_v6  ;;  %v2370_v7 = vadd.f32 %v2369_v34, %v2329_v36 }
 0x5b7   :  { %v2374_v8 = vadd.f32 %v2370_v7, %v4085_v50 }
 0x5b9   :  { %2376 = vst [vmem:[%s4222_s13 + $0x8] sm:$0xff] %v2374_v8 }

</bundles_post_ra>
